<compile_context>
chip_gen: v5e
topology: v5e:2x2
jax: 0.10.0
libtpu: 0.0.40
codegen_flags: <defaults>
</compile_context>

<pallas_src>
import functools

import jax
import jax.numpy as jnp
from jax import lax
from jax.experimental import pallas as pl
from jax.experimental.pallas import tpu as pltpu

NUM_BLOCKS = 8          # MiddleFlow._make_flow(block, times=8, ...)
CONVS_PER_BLOCK = 3     # each block: 3 x (act -> SeparableConv2d -> BatchNorm2d)
KSIZE = 3               # depthwise 3x3, padding=1, stride=1
L = NUM_BLOCKS * CONVS_PER_BLOCK
WHALO = 8               # left/right W halo in the scratch (left=8 keeps stores aligned)


def _middle_flow_kernel(x_ref, dw_ref, pw_ref, shift_ref, o_ref, y_ref,
                        *, h, wp, w_valid, cp, mxu_dtype):
    # One grid step = (batch element n, layer l).
    #   x_ref:     (1, H, Wp, Cp)   input block (fetched once per n)
    #   dw_ref:    (1, 9, Cp)       depthwise taps of layer l
    #   pw_ref:    (1, Cp, Cp)      pointwise weights of layer l (BN scale pre-folded)
    #   shift_ref: (1, 1, Cp)       BN shift of layer l
    #   o_ref:     (1, H, Wp, Cp)   running residual `x` (resident across the l axis)
    #   y_ref:     (1, H+2, Wp+16, Cp) scratch holding relu(res) with a zero halo
    l = pl.program_id(1)
    s = l % CONVS_PER_BLOCK
    last_s = CONVS_PER_BLOCK - 1

    @pl.when(l == 0)
    def _init():
        y_ref[...] = jnp.zeros_like(y_ref)   # halo rows/cols stay 0 forever
        o_ref[...] = x_ref[...]              # running residual = block input

    @pl.when(s == 0)
    def _start_block():
        # res = x ; y = relu(res)   (aligned interior store: W offset = 8)
        y_ref[:, 1:h + 1, WHALO:WHALO + wp, :] = jnp.maximum(o_ref[...], 0.0)

    # ---- depthwise 3x3 (padding=1, groups=C): 9 shifted multiply-adds on the VPU.
    # Zero boundary comes from the scratch halo; H shifts are plain addressing,
    # W shifts read at halo offsets 7/8/9 (reads, not masked stores).
    taps = dw_ref[...]                       # (1, 9, Cp), loaded once per layer
    acc = None
    for kh in range(KSIZE):
        for kw in range(KSIZE):
            tap = taps[0, kh * KSIZE + kw].reshape(1, 1, 1, cp)
            win = y_ref[:, kh:kh + h, WHALO - 1 + kw:WHALO - 1 + kw + wp, :]
            term = win * tap
            acc = term if acc is None else acc + term

    # ---- pointwise 1x1 conv == channel matmul on the MXU (f32 accumulate).
    p = jnp.dot(acc.reshape(h * wp, cp).astype(mxu_dtype), pw_ref[0],
                preferred_element_type=jnp.float32)

    # ---- BatchNorm2d folded to per-channel affine (inference / running stats).
    # TODO(synk): training-mode BN (batch statistics) not implemented; eval-mode affine.
    res = p.reshape(1, h, wp, cp) + shift_ref[0, 0].reshape(1, 1, 1, cp)

    if wp != w_valid:
        # keep spatially-padded W columns exactly zero so they never leak through the
        # next layer's 3x3 window
        w_ids = lax.broadcasted_iota(jnp.int32, (1, h, wp, cp), 2)
        res = jnp.where(w_ids < w_valid, res, 0.0)

    @pl.when(s != last_s)
    def _carry():
        # y = relu(res) for the next conv of this block
        y_ref[:, 1:h + 1, WHALO:WHALO + wp, :] = jnp.maximum(res, 0.0)

    @pl.when(s == last_s)
    def _end_block():
        o_ref[...] = o_ref[...] + res        # identity shortcut: x = x + res


def middle_flow(x_nchw, dw, pw, scale, shift, *, mxu_dtype=None):
    """x_nchw: (N, C, H, W) f32.  dw: (L, 9, C) depthwise taps, pw: (L, C, C) pointwise
    (C_in x C_out), scale/shift: (L, C) folded eval-mode BN.  Returns (N, C, H, W)."""
    x_nchw = x_nchw.astype(jnp.float32)
    N, C, H, W = x_nchw.shape
    assert dw.shape[0] == L and pw.shape[0] == L

    cp = max(128, ((C + 127) // 128) * 128)   # lane-dense channels (728 -> 768)
    wp = ((W + 7) // 8) * 8                   # sublane-aligned W (19 -> 24)
    if mxu_dtype is None:
        # bf16 MXU operands only where the pointwise matmul dominates (real Xception
        # C=728); keep f32 at small C where the VPU dominates and tolerances are tight.
        mxu_dtype = jnp.bfloat16 if C >= 256 else jnp.float32

    x = jnp.transpose(x_nchw, (0, 2, 3, 1))                       # NCHW -> NHWC
    x = jnp.pad(x, ((0, 0), (0, 0), (0, wp - W), (0, cp - C)))

    dw_p = jnp.pad(dw.astype(jnp.float32), ((0, 0), (0, 0), (0, cp - C)))
    # fold BN scale into the pointwise weights (per output channel)
    pw_f = pw.astype(jnp.float32) * scale.astype(jnp.float32)[:, None, :]
    pw_p = jnp.pad(pw_f, ((0, 0), (0, cp - C), (0, cp - C))).astype(mxu_dtype)
    sh_p = jnp.pad(shift.astype(jnp.float32), ((0, 0), (0, cp - C))).reshape(L, 1, cp)

    kernel = functools.partial(_middle_flow_kernel, h=H, wp=wp, w_valid=W,
                               cp=cp, mxu_dtype=mxu_dtype)

    # rough VMEM budget: double-buffered x/o blocks + streamed weights + halo scratch
    act_bytes = H * wp * cp * 4
    vmem_bytes = (4 * act_bytes
                  + 2 * cp * cp * jnp.dtype(mxu_dtype).itemsize
                  + 2 * 10 * cp * 4
                  + (H + 2) * (wp + 2 * WHALO) * cp * 4)
    vmem_limit = int(min(64 * 2**20, max(32 * 2**20, 2 * vmem_bytes)))

    out = pl.pallas_call(
        kernel,
        out_shape=jax.ShapeDtypeStruct((N, H, wp, cp), jnp.float32),
        grid_spec=pltpu.PrefetchScalarGridSpec(
            num_scalar_prefetch=0,
            grid=(N, L),
            in_specs=[
                pl.BlockSpec((1, H, wp, cp), lambda n, l: (n, 0, 0, 0)),   # x
                pl.BlockSpec((1, 9, cp), lambda n, l: (l, 0, 0)),          # depthwise
                pl.BlockSpec((1, cp, cp), lambda n, l: (l, 0, 0)),         # pointwise
                pl.BlockSpec((1, 1, cp), lambda n, l: (l, 0, 0)),          # BN shift
            ],
            out_specs=pl.BlockSpec((1, H, wp, cp), lambda n, l: (n, 0, 0, 0)),
            scratch_shapes=[pltpu.VMEM((1, H + 2, wp + 2 * WHALO, cp), jnp.float32)],
        ),
        compiler_params=pltpu.CompilerParams(
            dimension_semantics=("parallel", "arbitrary"),
            vmem_limit_bytes=vmem_limit,
        ),
    )(x, dw_p, pw_p, sh_p)

    out = out[:, :, :W, :C]
    return jnp.transpose(out, (0, 3, 1, 2))                      # NHWC -> NCHW


def middle_flow_ref(x_nchw, dw, pw, scale, shift):
    """Pure-JAX f32 reference (same math, via lax.conv) for correctness checking."""
    x = jnp.transpose(x_nchw, (0, 2, 3, 1)).astype(jnp.float32)
    N, H, W, C = x.shape
    for b in range(NUM_BLOCKS):
        res = x
        for s in range(CONVS_PER_BLOCK):
            layer = b * CONVS_PER_BLOCK + s
            y = jax.nn.relu(res)
            d = jax.lax.conv_general_dilated(
                y, dw[layer].reshape(KSIZE, KSIZE, 1, C), (1, 1), 'SAME',
                dimension_numbers=('NHWC', 'HWIO', 'NHWC'),
                feature_group_count=C)
            p = jnp.einsum('nhwc,cd->nhwd', d, pw[layer])
            res = p * scale[layer] + shift[layer]
        x = x + res
    return jnp.transpose(x, (0, 3, 1, 2))


if __name__ == "__main__":
    # Small shapes consistent with the module (real Xception uses C=728; scaled down).
    N, C, H, W = 2, 32, 16, 16

    key = jax.random.PRNGKey(0)
    kx, kd, kp, kg, kb = jax.random.split(key, 5)

    x = jax.random.normal(kx, (N, C, H, W), jnp.float32)
    dw = 0.15 * jax.random.normal(kd, (L, 9, C), jnp.float32)           # depthwise taps
    pw = jax.random.normal(kp, (L, C, C), jnp.float32) / jnp.sqrt(C)    # pointwise 1x1
    scale = 1.0 + 0.1 * jax.random.normal(kg, (L, C), jnp.float32)      # gamma/sqrt(var+eps)
    shift = 0.1 * jax.random.normal(kb, (L, C), jnp.float32)            # beta - mean*scale

    out = jax.block_until_ready(middle_flow(x, dw, pw, scale, shift))
    ref = jax.block_until_ready(middle_flow_ref(x, dw, pw, scale, shift))

    assert out.shape == (N, C, H, W)
    max_err = float(jnp.max(jnp.abs(out - ref)))
    assert jnp.allclose(out, ref, atol=1e-3, rtol=1e-3), f"max err {max_err}"
    print("KERNEL_OK")
</pallas_src>

<mosaic_0001>
module attributes {stable_mosaic.version = 11 : i64} {
  func.func @_middle_flow_kernel(%arg0: i32, %arg1: i32, %arg2: memref<1x16x16x128xf32, #tpu.memory_space<vmem>>, %arg3: memref<1x9x128xf32, #tpu.memory_space<vmem>>, %arg4: memref<1x128x128xf32, #tpu.memory_space<vmem>>, %arg5: memref<1x1x128xf32, #tpu.memory_space<vmem>>, %arg6: memref<1x16x16x128xf32, #tpu.memory_space<vmem>>, %arg7: memref<1x18x32x128xf32, #tpu.memory_space<vmem>>) attributes {dimension_semantics = [#tpu.dimension_semantics<parallel>, #tpu.dimension_semantics<arbitrary>], iteration_bounds = array<i64: 2, 24>, scalar_prefetch = 0 : i64, scratch_operands = 1 : i64, tpu.core_type = #tpu.core_type<tc>, window_params = [{transform_indices = @transform_0, window_bounds = array<i64: 1, 16, 16, 128>}, {transform_indices = @transform_1, window_bounds = array<i64: 1, 9, 128>}, {transform_indices = @transform_2, window_bounds = array<i64: 1, 128, 128>}, {transform_indices = @transform_3, window_bounds = array<i64: 1, 1, 128>}, {transform_indices = @transform_4, window_bounds = array<i64: 1, 16, 16, 128>}]} {
    %c3_i32 = arith.constant 3 : i32
    %c0_i32 = arith.constant 0 : i32
    %0 = arith.cmpi eq, %c3_i32, %c0_i32 : i32
    %c1_i32 = arith.constant 1 : i32
    %1 = arith.select %0, %c1_i32, %c3_i32 : i32
    %2 = arith.remsi %arg1, %1 : i32
    %c0_i32_0 = arith.constant 0 : i32
    %3 = arith.cmpi ne, %2, %c0_i32_0 : i32
    %c0_i32_1 = arith.constant 0 : i32
    %4 = arith.cmpi slt, %2, %c0_i32_1 : i32
    %c0_i32_2 = arith.constant 0 : i32
    %5 = arith.cmpi slt, %1, %c0_i32_2 : i32
    %6 = arith.xori %4, %5 : i1
    %7 = arith.andi %6, %3 : i1
    %8 = arith.addi %2, %1 : i32
    %9 = arith.select %7, %8, %2 : i32
    %c0_i32_3 = arith.constant 0 : i32
    %10 = arith.cmpi eq, %arg1, %c0_i32_3 : i32
    %11 = arith.extui %10 : i1 to i32
    %c0_i32_4 = arith.constant 0 : i32
    %12 = arith.cmpi ne, %11, %c0_i32_4 : i32
    scf.if %12 {
      %cst_49 = arith.constant 0.000000e+00 : f32
      %95 = vector.broadcast %cst_49 : f32 to vector<1x18x32x128xf32>
      %c0_50 = arith.constant 0 : index
      %c0_51 = arith.constant 0 : index
      %c0_52 = arith.constant 0 : index
      %c0_53 = arith.constant 0 : index
      %96 = vector.load %arg7[%c0_50, %c0_51, %c0_52, %c0_53] : memref<1x18x32x128xf32, #tpu.memory_space<vmem>>, vector<1x18x32x128xf32>
      tpu.vector_store %arg7[%c0_50, %c0_51, %c0_52, %c0_53], %95 {strides = array<i32>} : memref<1x18x32x128xf32, #tpu.memory_space<vmem>>, vector<1x18x32x128xf32>,
      %c0_54 = arith.constant 0 : index
      %c0_55 = arith.constant 0 : index
      %c0_56 = arith.constant 0 : index
      %c0_57 = arith.constant 0 : index
      %97 = vector.load %arg2[%c0_54, %c0_55, %c0_56, %c0_57] : memref<1x16x16x128xf32, #tpu.memory_space<vmem>>, vector<1x16x16x128xf32>
      %c0_58 = arith.constant 0 : index
      %c0_59 = arith.constant 0 : index
      %c0_60 = arith.constant 0 : index
      %c0_61 = arith.constant 0 : index
      %98 = vector.load %arg6[%c0_58, %c0_59, %c0_60, %c0_61] : memref<1x16x16x128xf32, #tpu.memory_space<vmem>>, vector<1x16x16x128xf32>
      tpu.vector_store %arg6[%c0_58, %c0_59, %c0_60, %c0_61], %97 {strides = array<i32>} : memref<1x16x16x128xf32, #tpu.memory_space<vmem>>, vector<1x16x16x128xf32>,
    } else {
    }
    %c0_i32_5 = arith.constant 0 : i32
    %13 = arith.cmpi eq, %9, %c0_i32_5 : i32
    %14 = arith.extui %13 : i1 to i32
    %c0_i32_6 = arith.constant 0 : i32
    %15 = arith.cmpi ne, %14, %c0_i32_6 : i32
    scf.if %15 {
      %c0_49 = arith.constant 0 : index
      %c0_50 = arith.constant 0 : index
      %c0_51 = arith.constant 0 : index
      %c0_52 = arith.constant 0 : index
      %95 = vector.load %arg6[%c0_49, %c0_50, %c0_51, %c0_52] : memref<1x16x16x128xf32, #tpu.memory_space<vmem>>, vector<1x16x16x128xf32>
      %cst_53 = arith.constant 0.000000e+00 : f32
      %96 = vector.broadcast %cst_53 : f32 to vector<1x16x16x128xf32>
      %97 = arith.maximumf %95, %96 : vector<1x16x16x128xf32>
      %c0_54 = arith.constant 0 : index
      %c1_55 = arith.constant 1 : index
      %c8_56 = arith.constant 8 : index
      %c0_57 = arith.constant 0 : index
      %98 = vector.load %arg7[%c0_54, %c1_55, %c8_56, %c0_57] : memref<1x18x32x128xf32, #tpu.memory_space<vmem>>, vector<1x16x16x128xf32>
      tpu.vector_store %arg7[%c0_54, %c1_55, %c8_56, %c0_57], %97 {strides = array<i32>} : memref<1x18x32x128xf32, #tpu.memory_space<vmem>>, vector<1x16x16x128xf32>,
    } else {
    }
    %c0 = arith.constant 0 : index
    %c0_7 = arith.constant 0 : index
    %c0_8 = arith.constant 0 : index
    %16 = vector.load %arg3[%c0, %c0_7, %c0_8] : memref<1x9x128xf32, #tpu.memory_space<vmem>>, vector<1x9x128xf32>
    %17 = vector.extract_strided_slice %16 {offsets = [0, 0, 0], sizes = [1, 1, 128], strides = [1, 1, 1]} : vector<1x9x128xf32> to vector<1x1x128xf32>
    %18 = vector.shape_cast %17 : vector<1x1x128xf32> to vector<128xf32>
    %19 = vector.shape_cast %18 : vector<128xf32> to vector<1x1x1x128xf32>
    %c0_9 = arith.constant 0 : index
    %c0_10 = arith.constant 0 : index
    %c7 = arith.constant 7 : index
    %c0_11 = arith.constant 0 : index
    %20 = vector.load %arg7[%c0_9, %c0_10, %c7, %c0_11] : memref<1x18x32x128xf32, #tpu.memory_space<vmem>>, vector<1x16x16x128xf32>
    %21 = vector.broadcast %19 : vector<1x1x1x128xf32> to vector<1x16x16x128xf32>
    %22 = arith.mulf %20, %21 : vector<1x16x16x128xf32>
    %23 = vector.extract_strided_slice %16 {offsets = [0, 1, 0], sizes = [1, 1, 128], strides = [1, 1, 1]} : vector<1x9x128xf32> to vector<1x1x128xf32>
    %24 = vector.shape_cast %23 : vector<1x1x128xf32> to vector<128xf32>
    %25 = vector.shape_cast %24 : vector<128xf32> to vector<1x1x1x128xf32>
    %c0_12 = arith.constant 0 : index
    %c0_13 = arith.constant 0 : index
    %c8 = arith.constant 8 : index
    %c0_14 = arith.constant 0 : index
    %26 = vector.load %arg7[%c0_12, %c0_13, %c8, %c0_14] : memref<1x18x32x128xf32, #tpu.memory_space<vmem>>, vector<1x16x16x128xf32>
    %27 = vector.broadcast %25 : vector<1x1x1x128xf32> to vector<1x16x16x128xf32>
    %28 = arith.mulf %26, %27 : vector<1x16x16x128xf32>
    %29 = arith.addf %22, %28 : vector<1x16x16x128xf32>
    %30 = vector.extract_strided_slice %16 {offsets = [0, 2, 0], sizes = [1, 1, 128], strides = [1, 1, 1]} : vector<1x9x128xf32> to vector<1x1x128xf32>
    %31 = vector.shape_cast %30 : vector<1x1x128xf32> to vector<128xf32>
    %32 = vector.shape_cast %31 : vector<128xf32> to vector<1x1x1x128xf32>
    %c0_15 = arith.constant 0 : index
    %c0_16 = arith.constant 0 : index
    %c9 = arith.constant 9 : index
    %c0_17 = arith.constant 0 : index
    %33 = vector.load %arg7[%c0_15, %c0_16, %c9, %c0_17] : memref<1x18x32x128xf32, #tpu.memory_space<vmem>>, vector<1x16x16x128xf32>
    %34 = vector.broadcast %32 : vector<1x1x1x128xf32> to vector<1x16x16x128xf32>
    %35 = arith.mulf %33, %34 : vector<1x16x16x128xf32>
    %36 = arith.addf %29, %35 : vector<1x16x16x128xf32>
    %37 = vector.extract_strided_slice %16 {offsets = [0, 3, 0], sizes = [1, 1, 128], strides = [1, 1, 1]} : vector<1x9x128xf32> to vector<1x1x128xf32>
    %38 = vector.shape_cast %37 : vector<1x1x128xf32> to vector<128xf32>
    %39 = vector.shape_cast %38 : vector<128xf32> to vector<1x1x1x128xf32>
    %c0_18 = arith.constant 0 : index
    %c1 = arith.constant 1 : index
    %c7_19 = arith.constant 7 : index
    %c0_20 = arith.constant 0 : index
    %40 = vector.load %arg7[%c0_18, %c1, %c7_19, %c0_20] : memref<1x18x32x128xf32, #tpu.memory_space<vmem>>, vector<1x16x16x128xf32>
    %41 = vector.broadcast %39 : vector<1x1x1x128xf32> to vector<1x16x16x128xf32>
    %42 = arith.mulf %40, %41 : vector<1x16x16x128xf32>
    %43 = arith.addf %36, %42 : vector<1x16x16x128xf32>
    %44 = vector.extract_strided_slice %16 {offsets = [0, 4, 0], sizes = [1, 1, 128], strides = [1, 1, 1]} : vector<1x9x128xf32> to vector<1x1x128xf32>
    %45 = vector.shape_cast %44 : vector<1x1x128xf32> to vector<128xf32>
    %46 = vector.shape_cast %45 : vector<128xf32> to vector<1x1x1x128xf32>
    %c0_21 = arith.constant 0 : index
    %c1_22 = arith.constant 1 : index
    %c8_23 = arith.constant 8 : index
    %c0_24 = arith.constant 0 : index
    %47 = vector.load %arg7[%c0_21, %c1_22, %c8_23, %c0_24] : memref<1x18x32x128xf32, #tpu.memory_space<vmem>>, vector<1x16x16x128xf32>
    %48 = vector.broadcast %46 : vector<1x1x1x128xf32> to vector<1x16x16x128xf32>
    %49 = arith.mulf %47, %48 : vector<1x16x16x128xf32>
    %50 = arith.addf %43, %49 : vector<1x16x16x128xf32>
    %51 = vector.extract_strided_slice %16 {offsets = [0, 5, 0], sizes = [1, 1, 128], strides = [1, 1, 1]} : vector<1x9x128xf32> to vector<1x1x128xf32>
    %52 = vector.shape_cast %51 : vector<1x1x128xf32> to vector<128xf32>
    %53 = vector.shape_cast %52 : vector<128xf32> to vector<1x1x1x128xf32>
    %c0_25 = arith.constant 0 : index
    %c1_26 = arith.constant 1 : index
    %c9_27 = arith.constant 9 : index
    %c0_28 = arith.constant 0 : index
    %54 = vector.load %arg7[%c0_25, %c1_26, %c9_27, %c0_28] : memref<1x18x32x128xf32, #tpu.memory_space<vmem>>, vector<1x16x16x128xf32>
    %55 = vector.broadcast %53 : vector<1x1x1x128xf32> to vector<1x16x16x128xf32>
    %56 = arith.mulf %54, %55 : vector<1x16x16x128xf32>
    %57 = arith.addf %50, %56 : vector<1x16x16x128xf32>
    %58 = vector.extract_strided_slice %16 {offsets = [0, 6, 0], sizes = [1, 1, 128], strides = [1, 1, 1]} : vector<1x9x128xf32> to vector<1x1x128xf32>
    %59 = vector.shape_cast %58 : vector<1x1x128xf32> to vector<128xf32>
    %60 = vector.shape_cast %59 : vector<128xf32> to vector<1x1x1x128xf32>
    %c0_29 = arith.constant 0 : index
    %c2 = arith.constant 2 : index
    %c7_30 = arith.constant 7 : index
    %c0_31 = arith.constant 0 : index
    %61 = vector.load %arg7[%c0_29, %c2, %c7_30, %c0_31] : memref<1x18x32x128xf32, #tpu.memory_space<vmem>>, vector<1x16x16x128xf32>
    %62 = vector.broadcast %60 : vector<1x1x1x128xf32> to vector<1x16x16x128xf32>
    %63 = arith.mulf %61, %62 : vector<1x16x16x128xf32>
    %64 = arith.addf %57, %63 : vector<1x16x16x128xf32>
    %65 = vector.extract_strided_slice %16 {offsets = [0, 7, 0], sizes = [1, 1, 128], strides = [1, 1, 1]} : vector<1x9x128xf32> to vector<1x1x128xf32>
    %66 = vector.shape_cast %65 : vector<1x1x128xf32> to vector<128xf32>
    %67 = vector.shape_cast %66 : vector<128xf32> to vector<1x1x1x128xf32>
    %c0_32 = arith.constant 0 : index
    %c2_33 = arith.constant 2 : index
    %c8_34 = arith.constant 8 : index
    %c0_35 = arith.constant 0 : index
    %68 = vector.load %arg7[%c0_32, %c2_33, %c8_34, %c0_35] : memref<1x18x32x128xf32, #tpu.memory_space<vmem>>, vector<1x16x16x128xf32>
    %69 = vector.broadcast %67 : vector<1x1x1x128xf32> to vector<1x16x16x128xf32>
    %70 = arith.mulf %68, %69 : vector<1x16x16x128xf32>
    %71 = arith.addf %64, %70 : vector<1x16x16x128xf32>
    %72 = vector.extract_strided_slice %16 {offsets = [0, 8, 0], sizes = [1, 1, 128], strides = [1, 1, 1]} : vector<1x9x128xf32> to vector<1x1x128xf32>
    %73 = vector.shape_cast %72 : vector<1x1x128xf32> to vector<128xf32>
    %74 = vector.shape_cast %73 : vector<128xf32> to vector<1x1x1x128xf32>
    %c0_36 = arith.constant 0 : index
    %c2_37 = arith.constant 2 : index
    %c9_38 = arith.constant 9 : index
    %c0_39 = arith.constant 0 : index
    %75 = vector.load %arg7[%c0_36, %c2_37, %c9_38, %c0_39] : memref<1x18x32x128xf32, #tpu.memory_space<vmem>>, vector<1x16x16x128xf32>
    %76 = vector.broadcast %74 : vector<1x1x1x128xf32> to vector<1x16x16x128xf32>
    %77 = arith.mulf %75, %76 : vector<1x16x16x128xf32>
    %78 = arith.addf %71, %77 : vector<1x16x16x128xf32>
    %79 = vector.shape_cast %78 : vector<1x16x16x128xf32> to vector<256x128xf32>
    %c0_40 = arith.constant 0 : index
    %c0_41 = arith.constant 0 : index
    %c0_42 = arith.constant 0 : index
    %80 = vector.load %arg4[%c0_40, %c0_41, %c0_42] : memref<1x128x128xf32, #tpu.memory_space<vmem>>, vector<1x128x128xf32>
    %81 = vector.shape_cast %80 : vector<1x128x128xf32> to vector<128x128xf32>
    %cst = arith.constant dense<0.000000e+00> : vector<256x128xf32>
    %82 = tpu.matmul %79, %81, %cst {dimension_numbers = #tpu.dot_dimension_numbers<[1], [0], [0], [1], [0, 0, 1, 1], [], []>} : vector<256x128xf32>, vector<128x128xf32>, vector<256x128xf32> -> vector<256x128xf32>
    %83 = vector.shape_cast %82 : vector<256x128xf32> to vector<1x16x16x128xf32>
    %c0_43 = arith.constant 0 : index
    %c0_44 = arith.constant 0 : index
    %c0_45 = arith.constant 0 : index
    %84 = vector.load %arg5[%c0_43, %c0_44, %c0_45] : memref<1x1x128xf32, #tpu.memory_space<vmem>>, vector<1x1x128xf32>
    %85 = vector.shape_cast %84 : vector<1x1x128xf32> to vector<128xf32>
    %86 = vector.shape_cast %85 : vector<128xf32> to vector<1x1x1x128xf32>
    %87 = vector.broadcast %86 : vector<1x1x1x128xf32> to vector<1x16x16x128xf32>
    %88 = arith.addf %83, %87 : vector<1x16x16x128xf32>
    %c2_i32 = arith.constant 2 : i32
    %89 = arith.cmpi ne, %9, %c2_i32 : i32
    %90 = arith.extui %89 : i1 to i32
    %c0_i32_46 = arith.constant 0 : i32
    %91 = arith.cmpi ne, %90, %c0_i32_46 : i32
    scf.if %91 {
      %cst_49 = arith.constant 0.000000e+00 : f32
      %95 = vector.broadcast %cst_49 : f32 to vector<1x16x16x128xf32>
      %96 = arith.maximumf %88, %95 : vector<1x16x16x128xf32>
      %c0_50 = arith.constant 0 : index
      %c1_51 = arith.constant 1 : index
      %c8_52 = arith.constant 8 : index
      %c0_53 = arith.constant 0 : index
      %97 = vector.load %arg7[%c0_50, %c1_51, %c8_52, %c0_53] : memref<1x18x32x128xf32, #tpu.memory_space<vmem>>, vector<1x16x16x128xf32>
      tpu.vector_store %arg7[%c0_50, %c1_51, %c8_52, %c0_53], %96 {strides = array<i32>} : memref<1x18x32x128xf32, #tpu.memory_space<vmem>>, vector<1x16x16x128xf32>,
    } else {
    }
    %c2_i32_47 = arith.constant 2 : i32
    %92 = arith.cmpi eq, %9, %c2_i32_47 : i32
    %93 = arith.extui %92 : i1 to i32
    %c0_i32_48 = arith.constant 0 : i32
    %94 = arith.cmpi ne, %93, %c0_i32_48 : i32
    scf.if %94 {
      %c0_49 = arith.constant 0 : index
      %c0_50 = arith.constant 0 : index
      %c0_51 = arith.constant 0 : index
      %c0_52 = arith.constant 0 : index
      %95 = vector.load %arg6[%c0_49, %c0_50, %c0_51, %c0_52] : memref<1x16x16x128xf32, #tpu.memory_space<vmem>>, vector<1x16x16x128xf32>
      %96 = arith.addf %95, %88 : vector<1x16x16x128xf32>
      %c0_53 = arith.constant 0 : index
      %c0_54 = arith.constant 0 : index
      %c0_55 = arith.constant 0 : index
      %c0_56 = arith.constant 0 : index
      %97 = vector.load %arg6[%c0_53, %c0_54, %c0_55, %c0_56] : memref<1x16x16x128xf32, #tpu.memory_space<vmem>>, vector<1x16x16x128xf32>
      tpu.vector_store %arg6[%c0_53, %c0_54, %c0_55, %c0_56], %96 {strides = array<i32>} : memref<1x16x16x128xf32, #tpu.memory_space<vmem>>, vector<1x16x16x128xf32>,
    } else {
    }
    return
  }
  func.func @transform_0(%arg0: i32, %arg1: i32) -> (i32, i32, i32, i32) {
    %c0_i32 = arith.constant 0 : i32
    %c0_i32_0 = arith.constant 0 : i32
    %c0_i32_1 = arith.constant 0 : i32
    %c0_i32_2 = arith.constant 0 : i32
    return %arg0, %c0_i32, %c0_i32_0, %c0_i32_1 : i32, i32, i32, i32
  }
  func.func @transform_1(%arg0: i32, %arg1: i32) -> (i32, i32, i32) {
    %c0_i32 = arith.constant 0 : i32
    %c0_i32_0 = arith.constant 0 : i32
    %c0_i32_1 = arith.constant 0 : i32
    return %arg1, %c0_i32, %c0_i32_0 : i32, i32, i32
  }
  func.func @transform_2(%arg0: i32, %arg1: i32) -> (i32, i32, i32) {
    %c0_i32 = arith.constant 0 : i32
    %c0_i32_0 = arith.constant 0 : i32
    %c0_i32_1 = arith.constant 0 : i32
    return %arg1, %c0_i32, %c0_i32_0 : i32, i32, i32
  }
  func.func @transform_3(%arg0: i32, %arg1: i32) -> (i32, i32, i32) {
    %c0_i32 = arith.constant 0 : i32
    %c0_i32_0 = arith.constant 0 : i32
    %c0_i32_1 = arith.constant 0 : i32
    return %arg1, %c0_i32, %c0_i32_0 : i32, i32, i32
  }
  func.func @transform_4(%arg0: i32, %arg1: i32) -> (i32, i32, i32, i32) {
    %c0_i32 = arith.constant 0 : i32
    %c0_i32_0 = arith.constant 0 : i32
    %c0_i32_1 = arith.constant 0 : i32
    %c0_i32_2 = arith.constant 0 : i32
    return %arg0, %c0_i32, %c0_i32_0, %c0_i32_1 : i32, i32, i32, i32
  }
}

</mosaic_0001>

<bundles_post_ra>
// kernel: tpu_custom_call.1
= control target key start
LH: loop header
LB: loop body
LE: loop exit
PB: predicated region body
PF: predicated region fallthrough
CT: control target
= control target key end

     0   :  { %s3791_s0 = inlined_call_operand.hbm [shape: f32[2,16,16,128], index: 0, kind: input, shape index: {}]   ;;  %s3792_s1 = inlined_call_operand.vmem [shape: f32[24,9,128], index: 1, kind: input, shape index: {}]   ;;  %s3793_s2 = inlined_call_operand.hbm [shape: f32[24,128,128], index: 2, kind: input, shape index: {}]   ;;  %s3794_s3 = inlined_call_operand.hbm [shape: f32[24,1,128], index: 3, kind: input, shape index: {}]   ;;  %s3795_s4 = inlined_call_operand.hbm [shape: f32[2,16,16,128], index: 4, kind: output, shape index: {}]  }
   0x1   :  { %3868 = sst [smem:[#allocation59_spill]] %s3792_s1 }
   0x2   :  { %3869 = sst [smem:[#allocation60_spill]] %s3793_s2 }
   0x3   :  { %3870 = sst [smem:[#allocation61_spill]] %s3795_s4 }
   0x4   :  { %9 = vsyncpa [#allocation4], 0 }
   0x5   :  { %11 = vsyncpa [#allocation4 + $0x1], 0 }
   0x6   :  { %12 = vsyncpa [#allocation7], 0 }
   0x7   :  { %14 = vsyncpa [#allocation7 + $0x1], 0 }
   0x8   :  { %15 = vsyncpa [#allocation5], 0 }
   0x9   :  { %17 = vsyncpa [#allocation5 + $0x1], 0  ;;  %s2359_s15 = smov 0   ;;  %s2361_s16 = smov 0  }
   0xa   :  { %s2363_s17 = smov 0   ;;  %s2365_s18 = smov 0  }
   0xb   :  { %s2367_s19 = smov 0   ;;  %s2369_s20 = smov 0  }
   0xc   :  { %s2371_s21 = smov 0   ;;  %s2373_s22 = smov 0  }
   0xd   :  { %s2375_s23 = smov 0   ;;  %s2377_s24 = smov 0  }
   0xe   :  { %s2379_s25 = smov 0  }
   0xf LB: > { %3871 = sst [smem:[#allocation13_spill]] %s2299_s18  ;;  %s2413_s26 = sadd.s32 4294967295, %s2327_s25   ;;  %s2327_s25 = sphi %s2379_s25, %s23_s25   ;;  %s2323_s24 = sphi %s2377_s24, %s4008_s24   ;;  %s2319_s23 = sphi %s2375_s23, %s4007_s23   ;;  %s2315_s22 = sphi %s2373_s22, %s3998_s22   ;;  %s2311_s21 = sphi %s2371_s21, %s4006_s21   ;;  %s2307_s20 = sphi %s2369_s20, %s3997_s20   ;;  %s2303_s19 = sphi %s2367_s19, %s4005_s19   ;;  %s2299_s18 = sphi %s2365_s18, %s4004_s18   ;;  %s2295_s17 = sphi %s2363_s17, %s4003_s17   ;;  %s2291_s16 = sphi %s2361_s16, %s4002_s16   ;;  %s2287_s15 = sphi %s2359_s15, %s4001_s15  }
  0x10   : > { %3872 = sst [smem:[#allocation14_spill]] %s2307_s20  ;;  %s32_s27 = sadd.s32 1, %s2319_s23 }
  0x11   : > { %3873 = sst [smem:[#allocation15_spill]] %s2311_s21  ;;  %p2416_p0 = scmp.ge.s32.totalorder %s32_s27, 24 }
  0x12   : > { %3874 = sst [smem:[#allocation16_spill]] %s2315_s22  ;;  %p50_p1 = scmp.eq.s32.totalorder %s2327_s25, 0 }
  0x13   : > { %3875 = sst [smem:[#allocation17_spill]] %s2323_s24  ;;  %p56_p2 = scmp.eq.s32.totalorder %s2413_s26, 0 }
  0x14   : > { %s94_s29 = sadd.s32 1, %s2295_s17  ;;  %s4010_s27 = smov (%p2416_p0, %s32_s27), 0 }
  0x15   : > { %3877 = sst [smem:[#allocation18_spill]] %s4010_s27  ;;  %p101_p3 = scmp.ne.s32.totalorder %s2295_s17, %s2291_s16 }
  0x16   : > { %p107_p4 = scmp.ne.s32.totalorder %s2291_s16, %s2287_s15  ;;  %s91_s30 = ssub.s32 %s2319_s23, %s4010_s27 }
  0x17   : > { %p92_p5 = scmp.eq.s32.totalorder %s91_s30, 0  ;;  %p2434_p6 = por %p101_p3, %p50_p1 }
  0x18   : > { %p2440_p7 = por %p107_p4, %p56_p2  ;;  %p2009_p8 = scmp.lt.s32.totalorder %s2327_s25, 48 }
  0x19   : > { %s2446_s7 = scalar_select %p92_p5, %s2295_s17, %s94_s29  }
  0x1a   : > { %s213_s8 = sand.u32 1, %s2327_s25   ;;  %s3796_s9 = sand.u32 1, %s2295_s17  }
  0x1b   : > { %3880 = sst [smem:[#allocation19_spill]] %s2446_s7  ;;  %s1914_s10 = sshll.u32 %s3796_s9, 7 }
  0x1c   : > { %s1936_s11 = sshll.u32 %s2319_s23, 7  ;;  %s3881_s2 = sld [smem:[#allocation60_spill]] }
  0x1d   : > { %s217_s15 = scalar_lea.vmem [#allocation6], %s1914_s10  ;;  %p2460_p9 = pnand %p2009_p8, %p2434_p6 }
  0x1e   : > { %s225_s30 = sshll.u32 %s217_s15, 4  ;;  %p1917_p10 = scmp.ge.s32.totalorder %s2327_s25, 1  ;;  %s226_s30 = int_to_ptr.vmem [resolvable:$true] %s225_s30 }
  0x1f   : > { %p250_p11 = scmp.lt.s32.totalorder %s2327_s25, 49  ;;  %s2466_s10 = scalar_lea.sflag [#allocation7], %s213_s8 }
  0x20   : > { %s3798_s12 = smov 8   ;;  %s1908_s13 = sadd.s32 4294967294, %s2327_s25  }
  0x21   : > { %p2474_p12 = pnand %p1917_p10, %p250_p11  ;;  %s42_s8 = sadd.s32 1, %s2307_s20 }
  0x22   : > { %s222_s14 = scalar_lea.hbm %s3881_s2, %s1936_s11  ;;  %s3797_s11 = smov 128  }
  0x23   : > { %s223_s29 = sshll.u32 %s222_s14, 4  ;;  %s35_s14 = sadd.s32 1, %s2323_s24  ;;  %s224_s29 = int_to_ptr.hbm [resolvable:$true] %s223_s29 }
  0x24   : > { %2001 = dma.hbm_to_vmem [thread:$0]  (!%p2460_p9), %s224_s29, 2048, %s226_s30, %s2466_s10, %s3797_s11, %s3797_s11, %s3798_s12  }
  0x25   : > { %s4012_s14 = smov (!%p2416_p0, %s35_s14), %s2323_s24  ;;  %p49_p13 = scmp.ne.s32.totalorder %s2307_s20, %s2303_s19 }
  0x26   : > { %p37_p3 = scmp.ge.s32.totalorder %s4012_s14, 2  ;;  %p55_p4 = scmp.ne.s32.totalorder %s2303_s19, %s2299_s18 }
  0x27   : > { %p2490_p5 = por %p50_p1, %p49_p13  ;;  %p157_p6 = scmp.eq.s32.totalorder %s2413_s26, 47 }
  0x28   : > { %s4014_s14 = smov (%p37_p3, %s4012_s14), 0  ;;  %p2499_p10 = por %p56_p2, %p55_p4 }
  0x29   : > { %3885 = sst [smem:[#allocation20_spill]] %s4014_s14  ;;  %p2503_p0 = por %p157_p6, %p49_p13 }
  0x2a   : > { %s39_s29 = ssub.s32 %s2323_s24, %s4014_s14  ;;  %p163_p1 = scmp.eq.s32.totalorder %s1908_s13, 47 }
  0x2b   : > { %s3887_s28 = scalar_select %p2503_p0, 1, 0 }
  0x2c   : > { %p40_p11 = scmp.eq.s32.totalorder %s39_s29, 0  ;;  %s183_s11 = sand.u32 1, %s2307_s20  }
  0x2d   : > { %3888 = sst [smem:[#allocation21_spill]] %s3887_s28  ;;  %p2510_p3 = por %p163_p1, %p55_p4 }
  0x2e   : > { %s2515_s2 = scalar_select %p40_p11, %s2307_s20, %s42_s8  }
  0x2f   : > { %s3889_s12 = scalar_select %p2510_p3, 1, 0 }
  0x30   : > { %3891 = sst [smem:[#allocation23_spill]] %s2515_s2  ;;  %s1911_s27 = sshll.u32 %s183_s11, 8 }
  0x31   : > { %3890 = sst [smem:[#allocation22_spill]] %s3889_s12  ;;  %s1935_s7 = sshll.u32 %s2323_s24, 8 }
  0x32   : > { %s192_s28 = scalar_lea.hbm %s3791_s0, %s1935_s7  ;;  %s187_s14 = scalar_lea.vmem [#allocation3], %s1911_s27 }
  0x33   : > { %s193_s22 = sshll.u32 %s192_s28, 4  ;;  %s195_s1 = sshll.u32 %s187_s14, 4  ;;  %s194_s22 = int_to_ptr.hbm [resolvable:$true] %s193_s22  ;;  %s196_s1 = int_to_ptr.vmem [resolvable:$true] %s195_s1 }
  0x34   : > { %p1996_p2 = pnand %p2009_p8, %p2490_p5  ;;  %s241_s8 = scalar_lea.hbm %s3794_s3, %s2319_s23 }
  0x35   : > { %s3892_s2 = sand.u32 1, %s2295_s17   ;;  %s243_s12 = sshll.u32 %s241_s8, 4  ;;  %s244_s12 = int_to_ptr.hbm [resolvable:$true] %s243_s12 }
  0x36   : > { %s238_s24 = scalar_lea.vmem [#allocation8], %s3892_s2  ;;  %s184_s4 = scalar_lea.sflag [#allocation4], %s183_s11 }
  0x37   : > { %s245_s20 = sshll.u32 %s238_s24, 4  ;;  %s3893_s18 = smov 8   ;;  %s246_s20 = int_to_ptr.vmem [resolvable:$true] %s245_s20 }
  0x38   : > { %s3894_s21 = smov 128   ;;  %254 = sbr.rel (%p2474_p12) target bundleno = 639 (0x27f), region = 36 }
  0x39   : > { %1998 = dma.hbm_to_vmem [thread:$0]  (!%p1996_p2), %s194_s22, 4096, %s196_s1, %s184_s4, %s3894_s21, %s3894_s21, %s3893_s18  }
  0x3a   : > { %2004 = dma.hbm_to_vmem [thread:$0]  (!%p2460_p9), %s244_s12, 16, %s246_s20, %s2466_s10  }
  0x3d   : > { %s2540_s27 = sand.u32 1, %s2303_s19  }
  0x3e   : > { %s1918_s2 = sshll.u32 %s2540_s27, 8  ;;  %s257_s24 = scalar_lea.sflag [#allocation4], %s2540_s27 }
  0x3f   : > { %s2544_s7 = scalar_lea.vmem [#allocation3], %s1918_s2 }
  0x40   : > { %2274 = dma.done.wait (%p2499_p10), %s257_s24, 4096  }
  0x41   : > { %2276 = vsyncadd (%p2499_p10), %s257_s24, 4294963200  ;;  %s266_s1 = sand.u32 1, %s2413_s26   ;;  %s268_s20 = sand.u32 1, %s2291_s16  }
  0x42   : > { %s1919_s21 = sshll.u32 %s268_s20, 7  ;;  %s267_s22 = scalar_lea.sflag [#allocation7], %s266_s1 }
  0x43   : > { %s2552_s9 = scalar_lea.vmem [#allocation6], %s1919_s21 }
  0x44   : > { %2278 = dma.done.wait (%p2440_p7), %s267_s22, 2064  }
  0x45   : > { %2280 = vsyncadd (%p2440_p7), %s267_s22, 4294965232  ;;  %s3895_s10 = sld [smem:[#allocation15_spill]]  ;;  %s2570_s4 = scalar_lea.vmem [#allocation8], %s268_s20 }
  0x46   : > { %s3896_s30 = sld [smem:[#allocation59_spill]]  ;;  %s2572_s18 = scalar_lea.vmem [#allocation9], %s1918_s2 }
  0x4b   : > { %p319_p8 = scmp.lt.s32.totalorder %s3895_s10, 23  ;;  %s325_s11 = ssub.s32 0, %s3895_s10 }
  0x4c   : > { %s1923_s5 = smin.u32 %s3895_s10, %s325_s11  ;;  %p324_p9 = scmp.lt.s32.totalorder %s3895_s10, 0 }
  0x4d   : > { %s320_s12 = scalar_select %p319_p8, %s3895_s10, 23 }
  0x4e   : > { %2105 = sdivrem.u32 %s1923_s5, 3  ;;  %p1926_p12 = scmp.ne.s32.totalorder %s3895_s10, 0 }
  0x4f   : > { %s1937_s26 = sshll.u32 %s320_s12, 4 }
  0x50   : > { %s2565_s28 = scalar_lea.vmem %s3896_s30, %s1937_s26 }
  0x57   : > { %s2106_s13 = spop.drf %2105 }
  0x58   : > { %s2107_s6 = spop.drf %2105 }
  0x59   : > { %s329_s29 = ssub.s32 0, %s2107_s6  ;;  %340 = sbr.rel (%p1926_p12) target bundleno = 199 (0xc7), region = 52 }
  0x5a   : > { %s4016_s29 = smov (!%p324_p9, %s329_s29), %s2107_s6 }
  0x5b   : > { %p1925_p7 = scmp.lt.s32.totalorder %s4016_s29, 0  ;;  %s335_s8 = sadd.s32 3, %s4016_s29 }
  0x5d   : > { %s4018_s8 = smov (!%p1925_p7, %s335_s8), %s4016_s29 }
  0x5e   : > { %v2331_v0 = vmov 0.0   ;;  %v413_v1 = vld [vmem:[%s2544_s7] sm:$0xff]  ;;  %v414_v2 = vld [vmem:[%s2544_s7 + $0x8] sm:$0xff]  ;;  %v415_v3 = vld [vmem:[%s2544_s7 + $0x10] sm:$0xff] }
  0x5f   : > { %341 = vst [vmem:[#allocation2] sm:$0xff] %v2331_v0  ;;  %v416_v4 = vld [vmem:[%s2544_s7 + $0x18] sm:$0xff]  ;;  %v417_v5 = vld [vmem:[%s2544_s7 + $0x20] sm:$0xff]  ;;  %v418_v6 = vld [vmem:[%s2544_s7 + $0x28] sm:$0xff] }
  0x60   : > { %342 = vst [vmem:[#allocation2 + $0x8] sm:$0xff] %v2331_v0  ;;  %v419_v7 = vld [vmem:[%s2544_s7 + $0x30] sm:$0xff]  ;;  %v420_v8 = vld [vmem:[%s2544_s7 + $0x38] sm:$0xff]  ;;  %v421_v9 = vld [vmem:[%s2544_s7 + $0x40] sm:$0xff] }
  0x61   : > { %343 = vst [vmem:[#allocation2 + $0x10] sm:$0xff] %v2331_v0  ;;  %v422_v10 = vld [vmem:[%s2544_s7 + $0x48] sm:$0xff]  ;;  %v423_v11 = vld [vmem:[%s2544_s7 + $0x50] sm:$0xff]  ;;  %v424_v12 = vld [vmem:[%s2544_s7 + $0x58] sm:$0xff] }
  0x62   : > { %344 = vst [vmem:[#allocation2 + $0x18] sm:$0xff] %v2331_v0  ;;  %v425_v13 = vld [vmem:[%s2544_s7 + $0x60] sm:$0xff]  ;;  %v426_v14 = vld [vmem:[%s2544_s7 + $0x68] sm:$0xff]  ;;  %v427_v15 = vld [vmem:[%s2544_s7 + $0x70] sm:$0xff] }
  0x63   : > { %345 = vst [vmem:[#allocation2 + $0x20] sm:$0xff] %v2331_v0  ;;  %v428_v16 = vld [vmem:[%s2544_s7 + $0x78] sm:$0xff]  ;;  %v429_v17 = vld [vmem:[%s2544_s7 + $0x80] sm:$0xff]  ;;  %v430_v18 = vld [vmem:[%s2544_s7 + $0x88] sm:$0xff] }
  0x64   : > { %346 = vst [vmem:[#allocation2 + $0x28] sm:$0xff] %v2331_v0  ;;  %v431_v19 = vld [vmem:[%s2544_s7 + $0x90] sm:$0xff]  ;;  %v432_v20 = vld [vmem:[%s2544_s7 + $0x98] sm:$0xff]  ;;  %v433_v21 = vld [vmem:[%s2544_s7 + $0xa0] sm:$0xff] }
  0x65   : > { %347 = vst [vmem:[#allocation2 + $0x30] sm:$0xff] %v2331_v0  ;;  %v434_v22 = vld [vmem:[%s2544_s7 + $0xa8] sm:$0xff]  ;;  %v435_v23 = vld [vmem:[%s2544_s7 + $0xb0] sm:$0xff]  ;;  %v436_v24 = vld [vmem:[%s2544_s7 + $0xb8] sm:$0xff] }
  0x66   : > { %348 = vst [vmem:[#allocation2 + $0x38] sm:$0xff] %v2331_v0  ;;  %v437_v25 = vld [vmem:[%s2544_s7 + $0xc0] sm:$0xff]  ;;  %v438_v26 = vld [vmem:[%s2544_s7 + $0xc8] sm:$0xff]  ;;  %v439_v27 = vld [vmem:[%s2544_s7 + $0xd0] sm:$0xff] }
  0x67   : > { %349 = vst [vmem:[#allocation2 + $0x40] sm:$0xff] %v2331_v0  ;;  %v440_v28 = vld [vmem:[%s2544_s7 + $0xd8] sm:$0xff]  ;;  %v441_v29 = vld [vmem:[%s2544_s7 + $0xe0] sm:$0xff]  ;;  %v442_v30 = vld [vmem:[%s2544_s7 + $0xe8] sm:$0xff] }
  0x68   : > { %350 = vst [vmem:[#allocation2 + $0x48] sm:$0xff] %v2331_v0  ;;  %v443_v31 = vld [vmem:[%s2544_s7 + $0xf0] sm:$0xff]  ;;  %v444_v32 = vld [vmem:[%s2544_s7 + $0xf8] sm:$0xff] }
  0x69   : > { %351 = vst [vmem:[#allocation2 + $0x50] sm:$0xff] %v2331_v0 }
  0x6a   : > { %352 = vst [vmem:[#allocation2 + $0x58] sm:$0xff] %v2331_v0 }
  0x6b   : > { %353 = vst [vmem:[#allocation2 + $0x60] sm:$0xff] %v2331_v0 }
  0x6c   : > { %354 = vst [vmem:[#allocation2 + $0x68] sm:$0xff] %v2331_v0 }
  0x6d   : > { %355 = vst [vmem:[#allocation2 + $0x70] sm:$0xff] %v2331_v0 }
  0x6e   : > { %356 = vst [vmem:[#allocation2 + $0x78] sm:$0xff] %v2331_v0 }
  0x6f   : > { %357 = vst [vmem:[#allocation2 + $0x80] sm:$0xff] %v2331_v0 }
  0x70   : > { %358 = vst [vmem:[#allocation2 + $0x88] sm:$0xff] %v2331_v0 }
  0x71   : > { %359 = vst [vmem:[#allocation2 + $0x90] sm:$0xff] %v2331_v0 }
  0x72   : > { %360 = vst [vmem:[#allocation2 + $0x98] sm:$0xff] %v2331_v0 }
  0x73   : > { %361 = vst [vmem:[#allocation2 + $0xa0] sm:$0xff] %v2331_v0 }
  0x74   : > { %362 = vst [vmem:[#allocation2 + $0xa8] sm:$0xff] %v2331_v0 }
  0x75   : > { %363 = vst [vmem:[#allocation2 + $0xb0] sm:$0xff] %v2331_v0 }
  0x76   : > { %364 = vst [vmem:[#allocation2 + $0xb8] sm:$0xff] %v2331_v0 }
  0x77   : > { %365 = vst [vmem:[#allocation2 + $0xc0] sm:$0xff] %v2331_v0 }
  0x78   : > { %366 = vst [vmem:[#allocation2 + $0xc8] sm:$0xff] %v2331_v0 }
  0x79   : > { %367 = vst [vmem:[#allocation2 + $0xd0] sm:$0xff] %v2331_v0 }
  0x7a   : > { %368 = vst [vmem:[#allocation2 + $0xd8] sm:$0xff] %v2331_v0 }
  0x7b   : > { %369 = vst [vmem:[#allocation2 + $0xe0] sm:$0xff] %v2331_v0 }
  0x7c   : > { %370 = vst [vmem:[#allocation2 + $0xe8] sm:$0xff] %v2331_v0 }
  0x7d   : > { %371 = vst [vmem:[#allocation2 + $0xf0] sm:$0xff] %v2331_v0 }
  0x7e   : > { %372 = vst [vmem:[#allocation2 + $0xf8] sm:$0xff] %v2331_v0 }
  0x7f   : > { %373 = vst [vmem:[#allocation2 + $0x100] sm:$0xff] %v2331_v0 }
  0x80   : > { %374 = vst [vmem:[#allocation2 + $0x108] sm:$0xff] %v2331_v0 }
  0x81   : > { %375 = vst [vmem:[#allocation2 + $0x110] sm:$0xff] %v2331_v0 }
  0x82   : > { %376 = vst [vmem:[#allocation2 + $0x118] sm:$0xff] %v2331_v0 }
  0x83   : > { %377 = vst [vmem:[#allocation2 + $0x120] sm:$0xff] %v2331_v0 }
  0x84   : > { %378 = vst [vmem:[#allocation2 + $0x128] sm:$0xff] %v2331_v0 }
  0x85   : > { %379 = vst [vmem:[#allocation2 + $0x130] sm:$0xff] %v2331_v0 }
  0x86   : > { %380 = vst [vmem:[#allocation2 + $0x138] sm:$0xff] %v2331_v0 }
  0x87   : > { %381 = vst [vmem:[#allocation2 + $0x140] sm:$0xff] %v2331_v0 }
  0x88   : > { %382 = vst [vmem:[#allocation2 + $0x148] sm:$0xff] %v2331_v0 }
  0x89   : > { %383 = vst [vmem:[#allocation2 + $0x150] sm:$0xff] %v2331_v0 }
  0x8a   : > { %384 = vst [vmem:[#allocation2 + $0x158] sm:$0xff] %v2331_v0 }
  0x8b   : > { %385 = vst [vmem:[#allocation2 + $0x160] sm:$0xff] %v2331_v0 }
  0x8c   : > { %386 = vst [vmem:[#allocation2 + $0x168] sm:$0xff] %v2331_v0 }
  0x8d   : > { %387 = vst [vmem:[#allocation2 + $0x170] sm:$0xff] %v2331_v0 }
  0x8e   : > { %388 = vst [vmem:[#allocation2 + $0x178] sm:$0xff] %v2331_v0 }
  0x8f   : > { %389 = vst [vmem:[#allocation2 + $0x180] sm:$0xff] %v2331_v0 }
  0x90   : > { %390 = vst [vmem:[#allocation2 + $0x188] sm:$0xff] %v2331_v0 }
  0x91   : > { %391 = vst [vmem:[#allocation2 + $0x190] sm:$0xff] %v2331_v0 }
  0x92   : > { %392 = vst [vmem:[#allocation2 + $0x198] sm:$0xff] %v2331_v0 }
  0x93   : > { %393 = vst [vmem:[#allocation2 + $0x1a0] sm:$0xff] %v2331_v0 }
  0x94   : > { %394 = vst [vmem:[#allocation2 + $0x1a8] sm:$0xff] %v2331_v0 }
  0x95   : > { %395 = vst [vmem:[#allocation2 + $0x1b0] sm:$0xff] %v2331_v0 }
  0x96   : > { %396 = vst [vmem:[#allocation2 + $0x1b8] sm:$0xff] %v2331_v0 }
  0x97   : > { %397 = vst [vmem:[#allocation2 + $0x1c0] sm:$0xff] %v2331_v0 }
  0x98   : > { %398 = vst [vmem:[#allocation2 + $0x1c8] sm:$0xff] %v2331_v0 }
  0x99   : > { %399 = vst [vmem:[#allocation2 + $0x1d0] sm:$0xff] %v2331_v0 }
  0x9a   : > { %400 = vst [vmem:[#allocation2 + $0x1d8] sm:$0xff] %v2331_v0 }
  0x9b   : > { %401 = vst [vmem:[#allocation2 + $0x1e0] sm:$0xff] %v2331_v0 }
  0x9c   : > { %402 = vst [vmem:[#allocation2 + $0x1e8] sm:$0xff] %v2331_v0 }
  0x9d   : > { %403 = vst [vmem:[#allocation2 + $0x1f0] sm:$0xff] %v2331_v0 }
  0x9e   : > { %404 = vst [vmem:[#allocation2 + $0x1f8] sm:$0xff] %v2331_v0 }
  0x9f   : > { %405 = vst [vmem:[#allocation2 + $0x200] sm:$0xff] %v2331_v0 }
  0xa0   : > { %406 = vst [vmem:[#allocation2 + $0x208] sm:$0xff] %v2331_v0 }
  0xa1   : > { %407 = vst [vmem:[#allocation2 + $0x210] sm:$0xff] %v2331_v0 }
  0xa2   : > { %408 = vst [vmem:[#allocation2 + $0x218] sm:$0xff] %v2331_v0 }
  0xa3   : > { %409 = vst [vmem:[#allocation2 + $0x220] sm:$0xff] %v2331_v0 }
  0xa4   : > { %410 = vst [vmem:[#allocation2 + $0x228] sm:$0xff] %v2331_v0 }
  0xa5   : > { %411 = vst [vmem:[#allocation2 + $0x230] sm:$0xff] %v2331_v0 }
  0xa6   : > { %412 = vst [vmem:[#allocation2 + $0x238] sm:$0xff] %v2331_v0 }
  0xa7   : > { %445 = vst [vmem:[%s2572_s18] sm:$0xff] %v413_v1 }
  0xa8   : > { %446 = vst [vmem:[%s2572_s18 + $0x8] sm:$0xff] %v414_v2 }
  0xa9   : > { %447 = vst [vmem:[%s2572_s18 + $0x10] sm:$0xff] %v415_v3 }
  0xaa   : > { %448 = vst [vmem:[%s2572_s18 + $0x18] sm:$0xff] %v416_v4 }
  0xab   : > { %449 = vst [vmem:[%s2572_s18 + $0x20] sm:$0xff] %v417_v5 }
  0xac   : > { %450 = vst [vmem:[%s2572_s18 + $0x28] sm:$0xff] %v418_v6 }
  0xad   : > { %451 = vst [vmem:[%s2572_s18 + $0x30] sm:$0xff] %v419_v7 }
  0xae   : > { %452 = vst [vmem:[%s2572_s18 + $0x38] sm:$0xff] %v420_v8 }
  0xaf   : > { %453 = vst [vmem:[%s2572_s18 + $0x40] sm:$0xff] %v421_v9 }
  0xb0   : > { %454 = vst [vmem:[%s2572_s18 + $0x48] sm:$0xff] %v422_v10 }
  0xb1   : > { %455 = vst [vmem:[%s2572_s18 + $0x50] sm:$0xff] %v423_v11 }
  0xb2   : > { %456 = vst [vmem:[%s2572_s18 + $0x58] sm:$0xff] %v424_v12 }
  0xb3   : > { %457 = vst [vmem:[%s2572_s18 + $0x60] sm:$0xff] %v425_v13 }
  0xb4   : > { %458 = vst [vmem:[%s2572_s18 + $0x68] sm:$0xff] %v426_v14 }
  0xb5   : > { %459 = vst [vmem:[%s2572_s18 + $0x70] sm:$0xff] %v427_v15 }
  0xb6   : > { %460 = vst [vmem:[%s2572_s18 + $0x78] sm:$0xff] %v428_v16 }
  0xb7   : > { %461 = vst [vmem:[%s2572_s18 + $0x80] sm:$0xff] %v429_v17 }
  0xb8   : > { %462 = vst [vmem:[%s2572_s18 + $0x88] sm:$0xff] %v430_v18 }
  0xb9   : > { %463 = vst [vmem:[%s2572_s18 + $0x90] sm:$0xff] %v431_v19 }
  0xba   : > { %464 = vst [vmem:[%s2572_s18 + $0x98] sm:$0xff] %v432_v20 }
  0xbb   : > { %465 = vst [vmem:[%s2572_s18 + $0xa0] sm:$0xff] %v433_v21 }
  0xbc   : > { %466 = vst [vmem:[%s2572_s18 + $0xa8] sm:$0xff] %v434_v22 }
  0xbd   : > { %467 = vst [vmem:[%s2572_s18 + $0xb0] sm:$0xff] %v435_v23 }
  0xbe   : > { %468 = vst [vmem:[%s2572_s18 + $0xb8] sm:$0xff] %v436_v24 }
  0xbf   : > { %469 = vst [vmem:[%s2572_s18 + $0xc0] sm:$0xff] %v437_v25 }
  0xc0   : > { %470 = vst [vmem:[%s2572_s18 + $0xc8] sm:$0xff] %v438_v26 }
  0xc1   : > { %471 = vst [vmem:[%s2572_s18 + $0xd0] sm:$0xff] %v439_v27 }
  0xc2   : > { %472 = vst [vmem:[%s2572_s18 + $0xd8] sm:$0xff] %v440_v28 }
  0xc3   : > { %473 = vst [vmem:[%s2572_s18 + $0xe0] sm:$0xff] %v441_v29 }
  0xc4   : > { %474 = vst [vmem:[%s2572_s18 + $0xe8] sm:$0xff] %v442_v30 }
  0xc5   : > { %475 = vst [vmem:[%s2572_s18 + $0xf0] sm:$0xff] %v443_v31 }
  0xc6   : > { %476 = vst [vmem:[%s2572_s18 + $0xf8] sm:$0xff] %v444_v32 }
  0xc7 PF: > { %p1927_p13 = scmp.ne.s32.totalorder %s4018_s8, 0 }
  0xc9   : > { %480 = sbr.rel (%p1927_p13) target bundleno = 241 (0xf1), region = 56 }
  0xce   : > { %v481_v33 = vld [vmem:[%s2572_s18] sm:$0xff]  ;;  %v482_v34 = vld [vmem:[%s2572_s18 + $0x8] sm:$0xff]  ;;  %v483_v35 = vld [vmem:[%s2572_s18 + $0x10] sm:$0xff] }
  0xcf   : > { %v513_v36 = vmax.f32 %v481_v33, 0.0  ;;  %v514_v37 = vmax.f32 %v482_v34, 0.0  ;;  %v515_v38 = vmax.f32 %v483_v35, 0.0  ;;  %v484_v39 = vld [vmem:[%s2572_s18 + $0x18] sm:$0xff]  ;;  %v485_v40 = vld [vmem:[%s2572_s18 + $0x20] sm:$0xff]  ;;  %v486_v41 = vld [vmem:[%s2572_s18 + $0x28] sm:$0xff] }
  0xd0   : > { %v516_v42 = vmax.f32 %v484_v39, 0.0  ;;  %v487_v43 = vld [vmem:[%s2572_s18 + $0x30] sm:$0xff]  ;;  %v517_v44 = vmax.f32 %v485_v40, 0.0  ;;  %v488_v45 = vld [vmem:[%s2572_s18 + $0x38] sm:$0xff]  ;;  %v518_v46 = vmax.f32 %v486_v41, 0.0  ;;  %v489_v47 = vld [vmem:[%s2572_s18 + $0x40] sm:$0xff] }
  0xd1   : > { %546 = vst [vmem:[#allocation2 + $0x28] sm:$0xff] %v513_v36  ;;  %v519_v48 = vmax.f32 %v487_v43, 0.0  ;;  %v490_v49 = vld [vmem:[%s2572_s18 + $0x48] sm:$0xff]  ;;  %v520_v50 = vmax.f32 %v488_v45, 0.0  ;;  %v491_v51 = vld [vmem:[%s2572_s18 + $0x50] sm:$0xff]  ;;  %v521_v52 = vmax.f32 %v489_v47, 0.0 }
  0xd2   : > { %547 = vst [vmem:[#allocation2 + $0x30] sm:$0xff] %v514_v37  ;;  %v492_v53 = vld [vmem:[%s2572_s18 + $0x58] sm:$0xff]  ;;  %v522_v54 = vmax.f32 %v490_v49, 0.0  ;;  %v493_v55 = vld [vmem:[%s2572_s18 + $0x60] sm:$0xff]  ;;  %v523_v56 = vmax.f32 %v491_v51, 0.0  ;;  %v494_v57 = vld [vmem:[%s2572_s18 + $0x68] sm:$0xff] }
  0xd3   : > { %548 = vst [vmem:[#allocation2 + $0x48] sm:$0xff] %v515_v38  ;;  %v524_v58 = vmax.f32 %v492_v53, 0.0  ;;  %v495_v59 = vld [vmem:[%s2572_s18 + $0x70] sm:$0xff]  ;;  %v525_v60 = vmax.f32 %v493_v55, 0.0  ;;  %v496_v61 = vld [vmem:[%s2572_s18 + $0x78] sm:$0xff]  ;;  %v526_v62 = vmax.f32 %v494_v57, 0.0 }
  0xd4   : > { %549 = vst [vmem:[#allocation2 + $0x50] sm:$0xff] %v516_v42  ;;  %v497_v63 = vld [vmem:[%s2572_s18 + $0x80] sm:$0xff]  ;;  %v527_v0 = vmax.f32 %v495_v59, 0.0  ;;  %v498_v1 = vld [vmem:[%s2572_s18 + $0x88] sm:$0xff]  ;;  %v528_v2 = vmax.f32 %v496_v61, 0.0  ;;  %v499_v3 = vld [vmem:[%s2572_s18 + $0x90] sm:$0xff] }
  0xd5   : > { %550 = vst [vmem:[#allocation2 + $0x68] sm:$0xff] %v517_v44  ;;  %v529_v4 = vmax.f32 %v497_v63, 0.0  ;;  %v500_v5 = vld [vmem:[%s2572_s18 + $0x98] sm:$0xff]  ;;  %v530_v6 = vmax.f32 %v498_v1, 0.0  ;;  %v501_v7 = vld [vmem:[%s2572_s18 + $0xa0] sm:$0xff]  ;;  %v531_v8 = vmax.f32 %v499_v3, 0.0 }
  0xd6   : > { %551 = vst [vmem:[#allocation2 + $0x70] sm:$0xff] %v518_v46  ;;  %v502_v9 = vld [vmem:[%s2572_s18 + $0xa8] sm:$0xff]  ;;  %v532_v10 = vmax.f32 %v500_v5, 0.0  ;;  %v503_v11 = vld [vmem:[%s2572_s18 + $0xb0] sm:$0xff]  ;;  %v533_v12 = vmax.f32 %v501_v7, 0.0  ;;  %v504_v13 = vld [vmem:[%s2572_s18 + $0xb8] sm:$0xff] }
  0xd7   : > { %552 = vst [vmem:[#allocation2 + $0x88] sm:$0xff] %v519_v48  ;;  %v534_v14 = vmax.f32 %v502_v9, 0.0  ;;  %v505_v15 = vld [vmem:[%s2572_s18 + $0xc0] sm:$0xff]  ;;  %v535_v16 = vmax.f32 %v503_v11, 0.0  ;;  %v506_v17 = vld [vmem:[%s2572_s18 + $0xc8] sm:$0xff]  ;;  %v536_v18 = vmax.f32 %v504_v13, 0.0 }
  0xd8   : > { %553 = vst [vmem:[#allocation2 + $0x90] sm:$0xff] %v520_v50  ;;  %v507_v19 = vld [vmem:[%s2572_s18 + $0xd0] sm:$0xff]  ;;  %v537_v20 = vmax.f32 %v505_v15, 0.0  ;;  %v508_v21 = vld [vmem:[%s2572_s18 + $0xd8] sm:$0xff]  ;;  %v538_v22 = vmax.f32 %v506_v17, 0.0  ;;  %v509_v23 = vld [vmem:[%s2572_s18 + $0xe0] sm:$0xff] }
  0xd9   : > { %554 = vst [vmem:[#allocation2 + $0xa8] sm:$0xff] %v521_v52  ;;  %v539_v24 = vmax.f32 %v507_v19, 0.0  ;;  %v510_v25 = vld [vmem:[%s2572_s18 + $0xe8] sm:$0xff]  ;;  %v540_v26 = vmax.f32 %v508_v21, 0.0  ;;  %v511_v27 = vld [vmem:[%s2572_s18 + $0xf0] sm:$0xff]  ;;  %v541_v28 = vmax.f32 %v509_v23, 0.0 }
  0xda   : > { %555 = vst [vmem:[#allocation2 + $0xb0] sm:$0xff] %v522_v54  ;;  %v512_v29 = vld [vmem:[%s2572_s18 + $0xf8] sm:$0xff]  ;;  %v542_v30 = vmax.f32 %v510_v25, 0.0  ;;  %v543_v31 = vmax.f32 %v511_v27, 0.0 }
  0xdb   : > { %556 = vst [vmem:[#allocation2 + $0xc8] sm:$0xff] %v523_v56  ;;  %v544_v32 = vmax.f32 %v512_v29, 0.0 }
  0xdc   : > { %557 = vst [vmem:[#allocation2 + $0xd0] sm:$0xff] %v524_v58 }
  0xdd   : > { %558 = vst [vmem:[#allocation2 + $0xe8] sm:$0xff] %v525_v60 }
  0xde   : > { %559 = vst [vmem:[#allocation2 + $0xf0] sm:$0xff] %v526_v62 }
  0xdf   : > { %560 = vst [vmem:[#allocation2 + $0x108] sm:$0xff] %v527_v0 }
  0xe0   : > { %561 = vst [vmem:[#allocation2 + $0x110] sm:$0xff] %v528_v2 }
  0xe1   : > { %562 = vst [vmem:[#allocation2 + $0x128] sm:$0xff] %v529_v4 }
  0xe2   : > { %563 = vst [vmem:[#allocation2 + $0x130] sm:$0xff] %v530_v6 }
  0xe3   : > { %564 = vst [vmem:[#allocation2 + $0x148] sm:$0xff] %v531_v8 }
  0xe4   : > { %565 = vst [vmem:[#allocation2 + $0x150] sm:$0xff] %v532_v10 }
  0xe5   : > { %566 = vst [vmem:[#allocation2 + $0x168] sm:$0xff] %v533_v12 }
  0xe6   : > { %567 = vst [vmem:[#allocation2 + $0x170] sm:$0xff] %v534_v14 }
  0xe7   : > { %568 = vst [vmem:[#allocation2 + $0x188] sm:$0xff] %v535_v16 }
  0xe8   : > { %569 = vst [vmem:[#allocation2 + $0x190] sm:$0xff] %v536_v18 }
  0xe9   : > { %570 = vst [vmem:[#allocation2 + $0x1a8] sm:$0xff] %v537_v20 }
  0xea   : > { %571 = vst [vmem:[#allocation2 + $0x1b0] sm:$0xff] %v538_v22 }
  0xeb   : > { %572 = vst [vmem:[#allocation2 + $0x1c8] sm:$0xff] %v539_v24 }
  0xec   : > { %573 = vst [vmem:[#allocation2 + $0x1d0] sm:$0xff] %v540_v26 }
  0xed   : > { %574 = vst [vmem:[#allocation2 + $0x1e8] sm:$0xff] %v541_v28 }
  0xee   : > { %575 = vst [vmem:[#allocation2 + $0x1f0] sm:$0xff] %v542_v30 }
  0xef   : > { %576 = vst [vmem:[#allocation2 + $0x208] sm:$0xff] %v543_v31 }
  0xf0   : > { %577 = vst [vmem:[#allocation2 + $0x210] sm:$0xff] %v544_v32 }
  0xf1 PF: > { %v1438_v33 = vld [vmem:[%s2552_s9 + $0x78] sm:$0xff]  ;;  %v1437_v34 = vld [vmem:[%s2552_s9 + $0x70] sm:$0xff]  ;;  %v1436_v35 = vld [vmem:[%s2552_s9 + $0x68] sm:$0xff]  ;;  %p1928_p4 = scmp.eq.s32.totalorder %s4018_s8, 2 }
  0xf2   : > { %1940 = vmatpush.msra.mxu2 %v1438_v33  ;;  %1941 = vmatpush.msra.mxu3 %v1438_v33  ;;  %v1435_v36 = vld [vmem:[%s2552_s9 + $0x60] sm:$0xff]  ;;  %v1434_v37 = vld [vmem:[%s2552_s9 + $0x58] sm:$0xff]  ;;  %v661_v41 = vld [vmem:[#allocation2 + $0x108] sm:$0xff] }
  0xf3   : > { %1439 = vmatpush.msra.mxu0 %v1438_v33  ;;  %1939 = vmatpush.msra.mxu1 %v1438_v33  ;;  %v578_v38 = vld [vmem:[%s2565_s28] sm:$0xff]  ;;  %v758_v43 = vld [vmem:[#allocation2 + $0x109] sm:$0xff]  ;;  %v2788_v0 = vld [vmem:[%s2565_s28 + $0x8] ss:$0 sm:$0xff] }
  0xf4   : > { %1943 = vmatpush.msra.mxu2 %v1437_v34  ;;  %1944 = vmatpush.msra.mxu3 %v1437_v34  ;;  %v596_v39 = vld [vmem:[#allocation2 + $0x107] sm:$0xff]  ;;  %v2750_v40 = vperm.slane %v578_v38, 0  ;;  %v2752_v42 = vperm.slane %v578_v38, 1  ;;  %v2754_v44 = vperm.slane %v578_v38, 2  ;;  %v1433_v45 = vld [vmem:[%s2552_s9 + $0x50] sm:$0xff]  ;;  %v2759_v47 = vperm.slane %v578_v38, 3 }
  0xf5   : > { %1440 = vmatpush.msra.mxu0 %v1437_v34  ;;  %1942 = vmatpush.msra.mxu1 %v1437_v34  ;;  %v2757_v46 = vld [vmem:[#allocation2 + $0x127] sm:$0xff]  ;;  %v2761_v48 = vperm.slane %v578_v38, 4  ;;  %v2763_v49 = vperm.slane %v578_v38, 5  ;;  %v2775_v57 = vperm.slane %v578_v38, 6  ;;  %v2779_v59 = vperm.slane %v578_v38, 7  ;;  %v1430_v20 = vld [vmem:[%s2552_s9 + $0x38] sm:$0xff] }
  0xf6   : > { %1946 = vmatpush.msra.mxu2 %v1436_v35  ;;  %1947 = vmatpush.msra.mxu3 %v1436_v35  ;;  %v1432_v50 = vld [vmem:[%s2552_s9 + $0x48] sm:$0xff]  ;;  %v629_v51 = vmul.f32 %v2750_v40, %v596_v39  ;;  %v694_v52 = vmul.f32 %v2752_v42, %v661_v41  ;;  %v791_v53 = vmul.f32 %v2754_v44, %v758_v43  ;;  %v1431_v9 = vld [vmem:[%s2552_s9 + $0x40] sm:$0xff]  ;;  %v1429_v30 = vld [vmem:[%s2552_s9 + $0x30] sm:$0xff] }
  0xf7   : > { %1441 = vmatpush.msra.mxu0 %v1436_v35  ;;  %1945 = vmatpush.msra.mxu1 %v1436_v35  ;;  %v2769_v54 = vld [vmem:[#allocation2 + $0x128] sm:$0xff]  ;;  %v889_v63 = vmul.f32 %v2759_v47, %v2757_v46 }
  0xf8   : > { %1949 = vmatpush.msra.mxu2 %v1435_v36  ;;  %1950 = vmatpush.msra.mxu3 %v1435_v36  ;;  %v2771_v55 = vld [vmem:[#allocation2 + $0x129] sm:$0xff]  ;;  %v726_v62 = vadd.f32 %v694_v52, %v629_v51  ;;  %v986_v4 = vmul.f32 %v2761_v48, %v2769_v54 }
  0xf9   : > { %1442 = vmatpush.msra.mxu0 %v1435_v36  ;;  %1948 = vmatpush.msra.mxu1 %v1435_v36  ;;  %v2773_v56 = vld [vmem:[#allocation2 + $0x147] sm:$0xff]  ;;  %v1083_v5 = vmul.f32 %v2763_v49, %v2771_v55 }
  0xfa   : > { %1952 = vmatpush.msra.mxu2 %v1434_v37  ;;  %1953 = vmatpush.msra.mxu3 %v1434_v37  ;;  %v2777_v58 = vld [vmem:[#allocation2 + $0x148] sm:$0xff]  ;;  %v823_v10 = vadd.f32 %v791_v53, %v726_v62  ;;  %v1181_v11 = vmul.f32 %v2775_v57, %v2773_v56 }
  0xfb   : > { %v2781_v60 = vld [vmem:[#allocation2 + $0x187] sm:$0xff]  ;;  %1443 = vmatpush.msra.mxu0 %v1434_v37  ;;  %1951 = vmatpush.msra.mxu1 %v1434_v37  ;;  %v2815_v15 = vmul.f32 %v2779_v59, %v2777_v58 }
  0xfc   : > { %3897 = vst [vmem:[#allocation24_spill] sm:$0xff] %v2781_v60  ;;  %v2783_v61 = vld [vmem:[#allocation2 + $0x188] sm:$0xff]  ;;  %v637_v1 = vmul.f32 %v2750_v40, %v2781_v60  ;;  %1955 = vmatpush.msra.mxu2 %v1433_v45  ;;  %1956 = vmatpush.msra.mxu3 %v1433_v45  ;;  %v921_v21 = vadd.f32 %v889_v63, %v823_v10  ;;  %v2965_v60 = vld [vmem:[#allocation2 + $0x1d1] sm:$0xff] }
  0xfd   : > { %3898 = vst [vmem:[#allocation25_spill] sm:$0xff] %v2783_v61  ;;  %v2792_v2 = vld [vmem:[#allocation2 + $0x189] sm:$0xff]  ;;  %v702_v7 = vmul.f32 %v2752_v42, %v2783_v61  ;;  %1444 = vmatpush.msra.mxu0 %v1433_v45  ;;  %1954 = vmatpush.msra.mxu1 %v1433_v45 }
  0xfe   : > { %3899 = vst [vmem:[#allocation26_spill] sm:$0xff] %v2792_v2  ;;  %v2794_v3 = vld [vmem:[#allocation2 + $0x1a7] sm:$0xff]  ;;  %v799_v12 = vmul.f32 %v2754_v44, %v2792_v2  ;;  %1958 = vmatpush.msra.mxu2 %v1432_v50  ;;  %1959 = vmatpush.msra.mxu3 %v1432_v50  ;;  %v1018_v31 = vadd.f32 %v986_v4, %v921_v21  ;;  %v2959_v2 = vld [vmem:[#allocation2 + $0x1cf] sm:$0xff] }
  0xff   : > { %v2800_v6 = vld [vmem:[#allocation2 + $0x149] sm:$0xff]  ;;  %v734_v16 = vadd.f32 %v702_v7, %v637_v1  ;;  %v897_v17 = vmul.f32 %v2759_v47, %v2794_v3  ;;  %1445 = vmatpush.msra.mxu0 %v1432_v50  ;;  %1957 = vmatpush.msra.mxu1 %v1432_v50  ;;  %v1427_v4 = vld [vmem:[%s2552_s9 + $0x20] sm:$0xff]  ;;  %3914 = vst [vmem:[#allocation41_spill] sm:$0xff] %v2959_v2 }
 0x100   : > { %v2804_v8 = vld [vmem:[#allocation2 + $0x1a8] sm:$0xff]  ;;  %v2822_v22 = vmul.f32 %v2788_v0, %v2800_v6  ;;  %1961 = vmatpush.msra.mxu2 %v1431_v9  ;;  %1962 = vmatpush.msra.mxu3 %v1431_v9  ;;  %v1115_v43 = vadd.f32 %v1083_v5, %v1018_v31  ;;  %v1425_v31 = vld [vmem:[%s2552_s9 + $0x10] sm:$0xff]  ;;  %3917 = vst [vmem:[#allocation44_spill] sm:$0xff] %v2965_v60 }
 0x101   : > { %v2811_v13 = vld [vmem:[#allocation2 + $0x1a9] sm:$0xff]  ;;  %v994_v23 = vmul.f32 %v2761_v48, %v2804_v8  ;;  %v831_v26 = vadd.f32 %v799_v12, %v734_v16  ;;  %1446 = vmatpush.msra.mxu0 %v1431_v9  ;;  %1960 = vmatpush.msra.mxu1 %v1431_v9 }
 0x102   : > { %v580_v14 = vld [vmem:[#allocation2 + $0x7] sm:$0xff]  ;;  %v1091_v27 = vmul.f32 %v2763_v49, %v2811_v13  ;;  %1964 = vmatpush.msra.mxu2 %v1430_v20  ;;  %1965 = vmatpush.msra.mxu3 %v1430_v20  ;;  %v1213_v5 = vadd.f32 %v1181_v11, %v1115_v43 }
 0x103   : > { %v645_v18 = vld [vmem:[#allocation2 + $0x8] sm:$0xff]  ;;  %v613_v28 = vmul.f32 %v2750_v40, %v580_v14  ;;  %v929_v36 = vadd.f32 %v897_v17, %v831_v26  ;;  %1447 = vmatpush.msra.mxu0 %v1430_v20  ;;  %1963 = vmatpush.msra.mxu1 %v1430_v20 }
 0x104   : > { %v742_v19 = vld [vmem:[#allocation2 + $0x9] sm:$0xff]  ;;  %v678_v33 = vmul.f32 %v2752_v42, %v645_v18  ;;  %1967 = vmatpush.msra.mxu2 %v1429_v30  ;;  %1968 = vmatpush.msra.mxu3 %v1429_v30  ;;  %v1426_v18 = vld [vmem:[%s2552_s9 + $0x18] sm:$0xff] }
 0x105   : > { %v2826_v24 = vld [vmem:[#allocation2 + $0x1c7] sm:$0xff]  ;;  %v775_v34 = vmul.f32 %v2754_v44, %v742_v19  ;;  %v1026_v53 = vadd.f32 %v994_v23, %v929_v36  ;;  %1448 = vmatpush.msra.mxu0 %v1429_v30  ;;  %1966 = vmatpush.msra.mxu1 %v1429_v30  ;;  %v1310_v19 = vadd.f32 %v2815_v15, %v1213_v5 }
 0x106   : > { %v2828_v25 = vld [vmem:[#allocation2 + $0x1c8] sm:$0xff]  ;;  %v1189_v37 = vmul.f32 %v2775_v57, %v2826_v24  ;;  %v710_v45 = vadd.f32 %v678_v33, %v613_v28 }
 0x107   : > { %v2833_v29 = vld [vmem:[#allocation2 + $0x27] sm:$0xff]  ;;  %v1286_v38 = vmul.f32 %v2779_v59, %v2828_v25  ;;  %v1123_v12 = vadd.f32 %v1091_v27, %v1026_v53 }
 0x108   : > { %v2836_v32 = vld [vmem:[#allocation2 + $0x1c9] sm:$0xff]  ;;  %v873_v50 = vmul.f32 %v2759_v47, %v2833_v29  ;;  %v807_v7 = vadd.f32 %v775_v34, %v710_v45 }
 0x109   : > { %v2840_v35 = vld [vmem:[#allocation2 + $0x28] sm:$0xff]  ;;  %v1383_v62 = vmul.f32 %v2788_v0, %v2836_v32  ;;  %v1221_v26 = vadd.f32 %v1189_v37, %v1123_v12  ;;  %v759_v12 = vld [vmem:[#allocation2 + $0x111] sm:$0xff] }
 0x10a   : > { %v2846_v39 = vld [vmem:[#allocation2 + $0x29] sm:$0xff]  ;;  %v970_v63 = vmul.f32 %v2761_v48, %v2840_v35  ;;  %v905_v20 = vadd.f32 %v873_v50, %v807_v7 }
 0x10b   : > { %v1428_v41 = vld [vmem:[%s2552_s9 + $0x28] sm:$0xff]  ;;  %v1067_v9 = vmul.f32 %v2763_v49, %v2846_v39  ;;  %v1318_v37 = vadd.f32 %v1286_v38, %v1221_v26  ;;  %v662_v50 = vld [vmem:[#allocation2 + $0x110] sm:$0xff] }
 0x10c   : > { %v2851_v51 = vld [vmem:[#allocation2 + $0x87] sm:$0xff]  ;;  %1970 = vmatpush.msra.mxu2 %v1428_v41  ;;  %1971 = vmatpush.msra.mxu3 %v1428_v41  ;;  %v1002_v15 = vadd.f32 %v970_v63, %v905_v20  ;;  %v597_v45 = vld [vmem:[#allocation2 + $0x10f] sm:$0xff]  ;;  %v1407_v63 = vadd.f32 %v2822_v22, %v1310_v19  ;;  %v695_v19 = vmul.f32 %v2752_v42, %v662_v50 }
 0x10d   : > { %3900 = vst [vmem:[#allocation27_spill] sm:$0xff] %v2851_v51  ;;  %v2853_v52 = vld [vmem:[#allocation2 + $0x88] sm:$0xff]  ;;  %v621_v17 = vmul.f32 %v2750_v40, %v2851_v51  ;;  %1449 = vmatpush.msra.mxu0 %v1428_v41  ;;  %1969 = vmatpush.msra.mxu1 %v1428_v41  ;;  %v1415_v38 = vadd.f32 %v1383_v62, %v1318_v37  ;;  %v2921_v50 = vld [vmem:[#allocation2 + $0x131] sm:$0xff] }
 0x10e   : > { %3901 = vst [vmem:[#allocation28_spill] sm:$0xff] %v2853_v52  ;;  %v2859_v1 = vld [vmem:[#allocation2 + $0x89] sm:$0xff]  ;;  %v686_v11 = vmul.f32 %v2752_v42, %v2853_v52  ;;  %1973 = vmatpush.msra.mxu2 %v1427_v4  ;;  %1974 = vmatpush.msra.mxu3 %v1427_v4 }
 0x10f   : > { %3902 = vst [vmem:[#allocation29_spill] sm:$0xff] %v2859_v1  ;;  %v2864_v10 = vld [vmem:[#allocation2 + $0xa7] sm:$0xff]  ;;  %v783_v21 = vmul.f32 %v2754_v44, %v2859_v1  ;;  %1450 = vmatpush.msra.mxu0 %v1427_v4  ;;  %1972 = vmatpush.msra.mxu1 %v1427_v4  ;;  %v1099_v4 = vadd.f32 %v1067_v9, %v1002_v15  ;;  %v2901_v20 = vld [vmem:[#allocation2 + $0x12f] sm:$0xff] }
 0x110   : > { %v2866_v14 = vld [vmem:[#allocation2 + $0x47] sm:$0xff]  ;;  %v718_v28 = vadd.f32 %v686_v11, %v621_v17  ;;  %v881_v30 = vmul.f32 %v2759_v47, %v2864_v10  ;;  %1976 = vmatpush.msra.mxu2 %v1426_v18  ;;  %1977 = vmatpush.msra.mxu3 %v1426_v18  ;;  %v890_v37 = vmul.f32 %v2759_v47, %v2901_v20 }
 0x111   : > { %v2868_v16 = vld [vmem:[#allocation2 + $0x48] sm:$0xff]  ;;  %v1165_v33 = vmul.f32 %v2775_v57, %v2866_v14  ;;  %1451 = vmatpush.msra.mxu0 %v1426_v18  ;;  %1975 = vmatpush.msra.mxu1 %v1426_v18  ;;  %v630_v18 = vmul.f32 %v2750_v40, %v597_v45  ;;  %3905 = vst [vmem:[#allocation32_spill] sm:$0xff] %v2921_v50 }
 0x112   : > { %v2878_v23 = vld [vmem:[#allocation2 + $0xa8] sm:$0xff]  ;;  %v1262_v34 = vmul.f32 %v2779_v59, %v2868_v16  ;;  %v815_v41 = vadd.f32 %v783_v21, %v718_v28  ;;  %1979 = vmatpush.msra.mxu2 %v1425_v31  ;;  %1980 = vmatpush.msra.mxu3 %v1425_v31  ;;  %v1423_v21 = vld [vmem:[%s2552_s9] sm:$0xff]  ;;  %v792_v28 = vmul.f32 %v2754_v44, %v759_v12 }
 0x113   : > { %v2880_v27 = vld [vmem:[#allocation2 + $0x49] sm:$0xff]  ;;  %v978_v43 = vmul.f32 %v2761_v48, %v2878_v23  ;;  %1452 = vmatpush.msra.mxu0 %v1425_v31  ;;  %1978 = vmatpush.msra.mxu1 %v1425_v31  ;;  %v1197_v22 = vadd.f32 %v1165_v33, %v1099_v4  ;;  %v727_v33 = vadd.f32 %v695_v19, %v630_v18 }
 0x114   : > { %v2889_v36 = vld [vmem:[#allocation2 + $0xa9] sm:$0xff]  ;;  %v1359_v5 = vmul.f32 %v2788_v0, %v2880_v27  ;;  %v913_v17 = vadd.f32 %v881_v30, %v815_v41 }
 0x115   : > { %v1424_v53 = vld [vmem:[%s2552_s9 + $0x8] sm:$0xff]  ;;  %v1075_v11 = vmul.f32 %v2763_v49, %v2889_v36  ;;  %v2911_v30 = vld [vmem:[#allocation2 + $0x130] sm:$0xff]  ;;  %v1294_v31 = vadd.f32 %v1262_v34, %v1197_v22  ;;  %v824_v12 = vadd.f32 %v792_v28, %v727_v33  ;;  %v1084_v28 = vmul.f32 %v2763_v49, %v2921_v50 }
 0x116   : > { %v2897_v7 = vld [vmem:[#allocation2 + $0xc7] sm:$0xff]  ;;  %1982 = vmatpush.msra.mxu2 %v1424_v53  ;;  %1983 = vmatpush.msra.mxu3 %v1424_v53  ;;  %v1010_v26 = vadd.f32 %v978_v43, %v913_v17  ;;  %v2917_v41 = vld [vmem:[#allocation2 + $0x18f] sm:$0xff]  ;;  %v987_v17 = vmul.f32 %v2761_v48, %v2911_v30 }
 0x117   : > { %v2904_v9 = vld [vmem:[#allocation2 + $0xc8] sm:$0xff]  ;;  %v1173_v62 = vmul.f32 %v2775_v57, %v2897_v7  ;;  %1453 = vmatpush.msra.mxu0 %v1424_v53  ;;  %1981 = vmatpush.msra.mxu1 %v1424_v53  ;;  %3904 = vst [vmem:[#allocation31_spill] sm:$0xff] %v2917_v41  ;;  %v2923_v4 = vld [vmem:[#allocation2 + $0x190] sm:$0xff]  ;;  %v1391_v34 = vadd.f32 %v1359_v5, %v1294_v31 }
 0x118   : > { %v2913_v15 = vld [vmem:[#allocation2 + $0xc9] sm:$0xff]  ;;  %1985 = vmatpush.msra.mxu2 %v1423_v21  ;;  %1986 = vmatpush.msra.mxu3 %v1423_v21  ;;  %v1107_v43 = vadd.f32 %v1075_v11, %v1010_v26  ;;  %v1270_v45 = vmul.f32 %v2779_v59, %v2904_v9  ;;  %3906 = vst [vmem:[#allocation33_spill] sm:$0xff] %v2923_v4  ;;  %v2925_v53 = vld [vmem:[#allocation2 + $0x191] sm:$0xff] }
 0x119   : > { %3903 = vst [vmem:[#allocation30_spill] sm:$0xff] %v2913_v15  ;;  %1503 = vmatmul.f32.vlgmr.msra.gmra.mxu2 %v1407_v63  ;;  %1527 = vmatmul.f32.vlgmr.msra.gmra.mxu3 %v1415_v38  ;;  %v2929_v22 = vld [vmem:[#allocation2 + $0x14f] sm:$0xff]  ;;  %v1367_v19 = vmul.f32 %v2788_v0, %v2913_v15  ;;  %v638_v63 = vmul.f32 %v2750_v40, %v2917_v41 }
 0x11a   : > { %3907 = vst [vmem:[#allocation34_spill] sm:$0xff] %v2925_v53  ;;  %v2931_v18 = vld [vmem:[#allocation2 + $0x150] sm:$0xff]  ;;  %1454 = vmatpush.msra.mxu0 %v1423_v21  ;;  %1984 = vmatpush.msra.mxu1 %v1423_v21  ;;  %v1205_v11 = vadd.f32 %v1173_v62, %v1107_v43  ;;  %v922_v38 = vadd.f32 %v890_v37, %v824_v12 }
 0x11b   : > { %3908 = vst [vmem:[#allocation35_spill] sm:$0xff] %v2929_v22  ;;  %v2935_v26 = vld [vmem:[#allocation2 + $0x151] sm:$0xff]  ;;  %1455 = vmatmul.f32.vlgmr.msra.gmra.mxu0 %v1391_v34  ;;  %v703_v31 = vmul.f32 %v2752_v42, %v2923_v4  ;;  %v800_v21 = vmul.f32 %v2754_v44, %v2925_v53  ;;  %v1182_v41 = vmul.f32 %v2775_v57, %v2929_v22 }
 0x11c   : > { %3909 = vst [vmem:[#allocation36_spill] sm:$0xff] %v2931_v18  ;;  %v2939_v5 = vld [vmem:[#allocation2 + $0x1af] sm:$0xff]  ;;  %v1302_v1 = vadd.f32 %v1270_v45, %v1205_v11  ;;  %v1279_v34 = vmul.f32 %v2779_v59, %v2931_v18  ;;  %v1019_v52 = vadd.f32 %v987_v17, %v922_v38  ;;  %v1376_v4 = vmul.f32 %v2788_v0, %v2935_v26 }
 0x11d   : > { %3910 = vst [vmem:[#allocation37_spill] sm:$0xff] %v2935_v26  ;;  %v581_v62 = vld [vmem:[#allocation2 + $0xf] sm:$0xff]  ;;  %v735_v51 = vadd.f32 %v703_v31, %v638_v63  ;;  %v898_v53 = vmul.f32 %v2759_v47, %v2939_v5 }
 0x11e   : > { %3911 = vst [vmem:[#allocation38_spill] sm:$0xff] %v2939_v5  ;;  %v646_v33 = vld [vmem:[#allocation2 + $0x10] sm:$0xff]  ;;  %v1399_v61 = vadd.f32 %v1367_v19, %v1302_v1  ;;  %v614_v18 = vmul.f32 %v2750_v40, %v581_v62  ;;  %v1116_v63 = vadd.f32 %v1084_v28, %v1019_v52  ;;  %v1190_v62 = vmul.f32 %v2775_v57, %v2959_v2 }
 0x11f   : > { %v743_v43 = vld [vmem:[#allocation2 + $0x11] sm:$0xff]  ;;  %v679_v17 = vmul.f32 %v2752_v42, %v646_v33  ;;  %v832_v31 = vadd.f32 %v800_v21, %v735_v51 }
 0x120   : > { %v2951_v37 = vld [vmem:[#allocation2 + $0x1b0] sm:$0xff]  ;;  %v776_v38 = vmul.f32 %v2754_v44, %v743_v43  ;;  %1479 = vmatmul.f32.vlgmr.msra.gmra.mxu1 %v1399_v61  ;;  %v1214_v43 = vadd.f32 %v1182_v41, %v1116_v63 }
 0x121   : > { %3912 = vst [vmem:[#allocation39_spill] sm:$0xff] %v2951_v37  ;;  %v2953_v12 = vld [vmem:[#allocation2 + $0x1b1] sm:$0xff]  ;;  %v995_v5 = vmul.f32 %v2761_v48, %v2951_v37  ;;  %v711_v51 = vadd.f32 %v679_v17, %v614_v18  ;;  %v1384_v37 = vmul.f32 %v2788_v0, %v2965_v60 }
 0x122   : > { %3913 = vst [vmem:[#allocation40_spill] sm:$0xff] %v2953_v12  ;;  %v2961_v45 = vld [vmem:[#allocation2 + $0x1d0] sm:$0xff]  ;;  %v1092_v22 = vmul.f32 %v2763_v49, %v2953_v12  ;;  %v930_v12 = vadd.f32 %v898_v53, %v832_v31  ;;  %v1311_v63 = vadd.f32 %v1279_v34, %v1214_v43 }
 0x123   : > { %3915 = vst [vmem:[#allocation42_spill] sm:$0xff] %v2961_v45  ;;  %v2963_v11 = vld [vmem:[#allocation2 + $0x2f] sm:$0xff]  ;;  %v1287_v52 = vmul.f32 %v2779_v59, %v2961_v45  ;;  %v808_v18 = vadd.f32 %v776_v38, %v711_v51 }
 0x124   : > { %3916 = vst [vmem:[#allocation43_spill] sm:$0xff] %v2963_v11  ;;  %v2970_v26 = vld [vmem:[#allocation2 + $0x8f] sm:$0xff]  ;;  %v874_v28 = vmul.f32 %v2759_v47, %v2963_v11  ;;  %v1027_v31 = vadd.f32 %v995_v5, %v930_v12  ;;  %v1408_v5 = vadd.f32 %v1376_v4, %v1311_v63 }
 0x125   : > { %3918 = vst [vmem:[#allocation45_spill] sm:$0xff] %v2970_v26  ;;  %v2976_v50 = vld [vmem:[#allocation2 + $0x30] sm:$0xff]  ;;  %v622_v2 = vmul.f32 %v2750_v40, %v2970_v26 }
 0x126   : > { %3919 = vst [vmem:[#allocation46_spill] sm:$0xff] %v2976_v50  ;;  %v2978_v1 = vld [vmem:[#allocation2 + $0x90] sm:$0xff]  ;;  %v971_v17 = vmul.f32 %v2761_v48, %v2976_v50  ;;  %v906_v38 = vadd.f32 %v874_v28, %v808_v18  ;;  %v1124_v12 = vadd.f32 %v1092_v22, %v1027_v31  ;;  %v631_v28 = vmul.f32 %v2757_v46, %v2750_v40 }
 0x127   : > { %3920 = vst [vmem:[#allocation47_spill] sm:$0xff] %v2978_v1  ;;  %v2980_v19 = vld [vmem:[#allocation2 + $0x91] sm:$0xff]  ;;  %v687_v45 = vmul.f32 %v2752_v42, %v2978_v1  ;;  %1506 = vmatmul.f32.gmra.mxu2 %v1408_v5  ;;  %v639_v31 = vmul.f32 %v2794_v3, %v2750_v40  ;;  %v899_v3 = vmul.f32 %v2826_v24, %v2759_v47 }
 0x128   : > { %3921 = vst [vmem:[#allocation48_spill] sm:$0xff] %v2980_v19  ;;  %v2988_v21 = vld [vmem:[#allocation2 + $0x31] sm:$0xff]  ;;  %v784_v41 = vmul.f32 %v2754_v44, %v2980_v19  ;;  %v1003_v18 = vadd.f32 %v971_v17, %v906_v38 }
 0x129   : > { %v2990_v33 = vld [vmem:[#allocation2 + $0x4f] sm:$0xff]  ;;  %v1068_v60 = vmul.f32 %v2763_v49, %v2988_v21  ;;  %v719_v1 = vadd.f32 %v687_v45, %v622_v2  ;;  %v696_v2 = vmul.f32 %v2769_v54, %v2752_v42  ;;  %v793_v45 = vmul.f32 %v2771_v55, %v2754_v44 }
 0x12a   : > { %3922 = vst [vmem:[#allocation49_spill] sm:$0xff] %v2990_v33  ;;  %v2994_v61 = vld [vmem:[#allocation2 + $0x50] sm:$0xff]  ;;  %v1166_v26 = vmul.f32 %v2775_v57, %v2990_v33  ;;  %v891_v54 = vmul.f32 %v2773_v56, %v2759_v47 }
 0x12b   : > { %3923 = vst [vmem:[#allocation50_spill] sm:$0xff] %v2994_v61  ;;  %v2998_v15 = vld [vmem:[#allocation2 + $0xaf] sm:$0xff]  ;;  %v1263_v51 = vmul.f32 %v2779_v59, %v2994_v61  ;;  %v816_v61 = vadd.f32 %v784_v41, %v719_v1  ;;  %v1100_v1 = vadd.f32 %v1068_v60, %v1003_v18  ;;  %v728_v41 = vadd.f32 %v696_v2, %v631_v28 }
 0x12c   : > { %3924 = vst [vmem:[#allocation51_spill] sm:$0xff] %v2998_v15  ;;  %v3006_v53 = vld [vmem:[#allocation2 + $0xb0] sm:$0xff]  ;;  %v882_v19 = vmul.f32 %v2759_v47, %v2998_v15  ;;  %v1222_v15 = vadd.f32 %v1190_v62, %v1124_v12  ;;  %v988_v62 = vmul.f32 %v2777_v58, %v2761_v48  ;;  %v801_v28 = vmul.f32 %v2811_v13, %v2754_v44  ;;  %v3058_v2 = vld [vmem:[#allocation2 + $0x168] sm:$0xff] }
 0x12d   : > { %v3014_v50 = vld [vmem:[#allocation2 + $0x51] sm:$0xff]  ;;  %v979_v43 = vmul.f32 %v2761_v48, %v3006_v53  ;;  %v1198_v38 = vadd.f32 %v1166_v26, %v1100_v1  ;;  %v825_v60 = vadd.f32 %v793_v45, %v728_v41  ;;  %3926 = vst [vmem:[#allocation53_spill] sm:$0xff] %v3058_v2  ;;  %v996_v1 = vmul.f32 %v2828_v25, %v2761_v48 }
 0x12e   : > { %v3018_v11 = vld [vmem:[#allocation2 + $0xb1] sm:$0xff]  ;;  %v1360_v4 = vmul.f32 %v2788_v0, %v3014_v50  ;;  %v914_v17 = vadd.f32 %v882_v19, %v816_v61  ;;  %v1319_v63 = vadd.f32 %v1287_v52, %v1222_v15  ;;  %v3048_v19 = vld [vmem:[#allocation2 + $0x167] sm:$0xff]  ;;  %v704_v61 = vmul.f32 %v2804_v8, %v2752_v42 }
 0x12f   : > { %v3020_v34 = vld [vmem:[#allocation2 + $0xcf] sm:$0xff]  ;;  %v1076_v22 = vmul.f32 %v2763_v49, %v3018_v11  ;;  %3925 = vst [vmem:[#allocation52_spill] sm:$0xff] %v3048_v19  ;;  %v1085_v52 = vmul.f32 %v2800_v6, %v2763_v49  ;;  %v1295_v26 = vadd.f32 %v1263_v51, %v1198_v38  ;;  %v923_v18 = vadd.f32 %v891_v54, %v825_v60 }
 0x130   : > { %v3026_v33 = vld [vmem:[#allocation2 + $0xd0] sm:$0xff]  ;;  %v1174_v46 = vmul.f32 %v2775_v57, %v3020_v34  ;;  %v1011_v5 = vadd.f32 %v979_v43, %v914_v17  ;;  %v1416_v15 = vadd.f32 %v1384_v37, %v1319_v63  ;;  %v736_v45 = vadd.f32 %v704_v61, %v639_v31 }
 0x131   : > { %v1271_v55 = vmul.f32 %v2779_v59, %v3026_v33  ;;  %v3046_v12 = vld [vmem:[#allocation2 + $0xd1] sm:$0xff]  ;;  %v1183_v37 = vmul.f32 %v2775_v57, %v3048_v19  ;;  %v1392_v13 = vadd.f32 %v1360_v4, %v1295_v26  ;;  %v1020_v41 = vadd.f32 %v988_v62, %v923_v18  ;;  %v3066_v63 = vld [vmem:[#allocation2 + $0x169] sm:$0xff] }
 0x132   : > { %v1108_v43 = vadd.f32 %v1076_v22, %v1011_v5  ;;  %1530 = vmatmul.f32.gmra.mxu3 %v1416_v15  ;;  %v1368_v8 = vmul.f32 %v2788_v0, %v3046_v12  ;;  %v833_v51 = vadd.f32 %v801_v28, %v736_v45  ;;  %v3068_v22 = vld [vmem:[#allocation2 + $0x1e7] sm:$0xff]  ;;  %v1280_v54 = vmul.f32 %v2779_v59, %v3058_v2 }
 0x133   : > { %v615_v31 = vmul.f32 %v2833_v29, %v2750_v40  ;;  %v680_v38 = vmul.f32 %v2840_v35, %v2752_v42  ;;  %v777_v5 = vmul.f32 %v2846_v39, %v2754_v44  ;;  %1458 = vmatmul.f32.gmra.mxu0 %v1392_v13  ;;  %v1093_v60 = vmul.f32 %v2836_v32, %v2763_v49  ;;  %v3084_v29 = vld [vmem:[#allocation2 + $0x1e8] sm:$0xff] }
 0x134   : > { %v1206_v17 = vadd.f32 %v1174_v46, %v1108_v43  ;;  %v1117_v46 = vadd.f32 %v1085_v52, %v1020_v41  ;;  %v931_v62 = vadd.f32 %v899_v3, %v833_v51  ;;  %v1377_v61 = vmul.f32 %v2788_v0, %v3066_v63  ;;  %v3086_v28 = vld [vmem:[#allocation2 + $0x1e9] sm:$0xff] }
 0x135   : > { %v1191_v15 = vmul.f32 %v2775_v57, %v3068_v22  ;;  %v712_v35 = vadd.f32 %v680_v38, %v615_v31  ;;  %v875_v39 = vmul.f32 %v2866_v14, %v2759_v47  ;;  %v972_v26 = vmul.f32 %v2868_v16, %v2761_v48  ;;  %v3092_v18 = vld [vmem:[#allocation2 + $0x67] sm:$0xff] }
 0x136   : > { %v1303_v4 = vadd.f32 %v1271_v55, %v1206_v17  ;;  %v1215_v52 = vadd.f32 %v1183_v37, %v1117_v46  ;;  %v1028_v3 = vadd.f32 %v996_v1, %v931_v62  ;;  %v623_v45 = vmul.f32 %v2864_v10, %v2750_v40  ;;  %v3106_v10 = vld [vmem:[#allocation2 + $0x68] sm:$0xff] }
 0x137   : > { %v809_v43 = vadd.f32 %v777_v5, %v712_v35  ;;  %v688_v13 = vmul.f32 %v2878_v23, %v2752_v42  ;;  %v785_v17 = vmul.f32 %v2889_v36, %v2754_v44  ;;  %v1288_v37 = vmul.f32 %v2779_v59, %v3084_v29  ;;  %v3114_v62 = vld [vmem:[#allocation2 + $0x69] sm:$0xff] }
 0x138   : > { %v1400_v55 = vadd.f32 %v1368_v8, %v1303_v4  ;;  %v1312_v41 = vadd.f32 %v1280_v54, %v1215_v52  ;;  %v1125_v8 = vadd.f32 %v1093_v60, %v1028_v3  ;;  %v1385_v1 = vmul.f32 %v2788_v0, %v3086_v28  ;;  %3927 = vst [vmem:[#allocation54_spill] sm:$0xff] %v3114_v62  ;;  %v3116_v35 = vld [vmem:[#allocation2 + $0xe7] sm:$0xff]  ;;  %v3929_v52 = vld [vmem:[#allocation30_spill] sm:$0xff] }
 0x139   : > { %v907_v51 = vadd.f32 %v875_v39, %v809_v43  ;;  %v1069_v31 = vmul.f32 %v2880_v27, %v2763_v49  ;;  %v720_v38 = vadd.f32 %v688_v13, %v623_v45  ;;  %v883_v23 = vmul.f32 %v2897_v7, %v2759_v47  ;;  %3928 = vst [vmem:[#allocation55_spill] sm:$0xff] %v3116_v35 }
 0x13a   : > { %1482 = vmatmul.f32.gmra.mxu1 %v1400_v55  ;;  %v1409_v36 = vadd.f32 %v1377_v61, %v1312_v41  ;;  %v1223_v5 = vadd.f32 %v1191_v15, %v1125_v8  ;;  %v1167_v54 = vmul.f32 %v2775_v57, %v3092_v18  ;;  %v980_v4 = vmul.f32 %v2904_v9, %v2761_v48  ;;  %v3130_v41 = vld [vmem:[#allocation2 + $0xe9] sm:$0xff] }
 0x13b   : > { %v1004_v46 = vadd.f32 %v972_v26, %v907_v51  ;;  %v817_v60 = vadd.f32 %v785_v17, %v720_v38  ;;  %v632_v39 = vmul.f32 %v2901_v20, %v2750_v40  ;;  %v697_v55 = vmul.f32 %v2911_v30, %v2752_v42  ;;  %v3930_v26 = vld [vmem:[#allocation32_spill] sm:$0xff]  ;;  %3932 = vst [vmem:[#allocation56_spill] sm:$0xff] %v3130_v41  ;;  %v3933_v30 = vld [vmem:[#allocation35_spill] sm:$0xff] }
 0x13c   : > { %1509 = vmatmul.f32.gmra.mxu2 %v1409_v36  ;;  %v1320_v61 = vadd.f32 %v1288_v37, %v1223_v5  ;;  %v1264_v15 = vmul.f32 %v2779_v59, %v3106_v10  ;;  %v1077_v3 = vmul.f32 %v3929_v52, %v2763_v49  ;;  %v794_v43 = vmul.f32 %v3930_v26, %v2754_v44  ;;  %v3128_v17 = vld [vmem:[#allocation2 + $0xe8] sm:$0xff]  ;;  %v3142_v26 = vld [vmem:[#allocation2 + $0x170] sm:$0xff] }
 0x13d   : > { %v1101_v45 = vadd.f32 %v1069_v31, %v1004_v46  ;;  %v915_v13 = vadd.f32 %v883_v23, %v817_v60  ;;  %3931 = vst [vmem:[#allocation32_spill] sm:$0xff] %v3128_v17  ;;  %v729_v20 = vadd.f32 %v697_v55, %v632_v39  ;;  %v892_v8 = vmul.f32 %v3933_v30, %v2759_v47  ;;  %v3934_v36 = vld [vmem:[#allocation36_spill] sm:$0xff]  ;;  %v3140_v60 = vld [vmem:[#allocation2 + $0x16f] sm:$0xff]  ;;  %v3938_v30 = vld [vmem:[#allocation39_spill] sm:$0xff] }
 0x13e   : > { %v1417_v37 = vadd.f32 %v1385_v1, %v1320_v61  ;;  %v1361_v51 = vmul.f32 %v2788_v0, %v3114_v62  ;;  %v1175_v38 = vmul.f32 %v2775_v57, %v3116_v35  ;;  %v989_v5 = vmul.f32 %v3934_v36, %v2761_v48  ;;  %3935 = vst [vmem:[#allocation57_spill] sm:$0xff] %v3140_v60  ;;  %v3937_v39 = vld [vmem:[#allocation38_spill] sm:$0xff] }
 0x13f   : > { %v1199_v31 = vadd.f32 %v1167_v54, %v1101_v45  ;;  %v1012_v23 = vadd.f32 %v980_v4, %v915_v13  ;;  %v826_v46 = vadd.f32 %v794_v43, %v729_v20  ;;  %3936 = vst [vmem:[#allocation58_spill] sm:$0xff] %v3142_v26  ;;  %v640_v55 = vmul.f32 %v3937_v39, %v2750_v40  ;;  %v3939_v54 = vld [vmem:[#allocation40_spill] sm:$0xff]  ;;  %v3940_v20 = vld [vmem:[#allocation37_spill] sm:$0xff] }
 0x140   : > { %1533 = vmatmul.f32.gmra.mxu3 %v1417_v37  ;;  %v1272_v1 = vmul.f32 %v2779_v59, %v3128_v17  ;;  %v1369_v61 = vmul.f32 %v2788_v0, %v3130_v41  ;;  %v705_v36 = vmul.f32 %v3938_v30, %v2752_v42  ;;  %v802_v4 = vmul.f32 %v3939_v54, %v2754_v44  ;;  %v3160_v17 = vld [vmem:[#allocation2 + $0x171] sm:$0xff] }
 0x141   : > { %v1296_v43 = vadd.f32 %v1264_v15, %v1199_v31  ;;  %v1109_v45 = vadd.f32 %v1077_v3, %v1012_v23  ;;  %v924_v13 = vadd.f32 %v892_v8, %v826_v46  ;;  %v1086_v35 = vmul.f32 %v3940_v20, %v2763_v49  ;;  %3941 = vst [vmem:[#allocation38_spill] sm:$0xff] %v3160_v17  ;;  %v3942_v30 = vld [vmem:[#allocation41_spill] sm:$0xff]  ;;  %v3944_v8 = vld [vmem:[#allocation43_spill] sm:$0xff]  ;;  %v3945_v46 = vld [vmem:[#allocation42_spill] sm:$0xff] }
 0x142   : > { %v1184_v37 = vmul.f32 %v2775_v57, %v3140_v60  ;;  %v1281_v39 = vmul.f32 %v2779_v59, %v3142_v26  ;;  %v737_v41 = vadd.f32 %v705_v36, %v640_v55  ;;  %v900_v62 = vmul.f32 %v3942_v30, %v2759_v47  ;;  %v3164_v3 = vld [vmem:[#allocation2 + $0x1ef] sm:$0xff] }
 0x143   : > { %v1393_v52 = vadd.f32 %v1361_v51, %v1296_v43  ;;  %v1207_v54 = vadd.f32 %v1175_v38, %v1109_v45  ;;  %v1021_v15 = vadd.f32 %v989_v5, %v924_v13  ;;  %3943 = vst [vmem:[#allocation39_spill] sm:$0xff] %v3164_v3  ;;  %v616_v31 = vmul.f32 %v3944_v8, %v2750_v40  ;;  %v3946_v26 = vld [vmem:[#allocation46_spill] sm:$0xff]  ;;  %v3947_v5 = vld [vmem:[#allocation44_spill] sm:$0xff]  ;;  %v3950_v8 = vld [vmem:[#allocation51_spill] sm:$0xff] }
 0x144   : > { %v834_v23 = vadd.f32 %v802_v4, %v737_v41  ;;  %v997_v60 = vmul.f32 %v3945_v46, %v2761_v48  ;;  %v681_v20 = vmul.f32 %v3946_v26, %v2752_v42  ;;  %v778_v36 = vmul.f32 %v2988_v21, %v2754_v44  ;;  %v3180_v4 = vld [vmem:[#allocation2 + $0x1f0] sm:$0xff] }
 0x145   : > { %1461 = vmatmul.f32.gmra.mxu0 %v1393_v52  ;;  %v1304_v55 = vadd.f32 %v1272_v1, %v1207_v54  ;;  %v1118_v51 = vadd.f32 %v1086_v35, %v1021_v15  ;;  %v1378_v38 = vmul.f32 %v2788_v0, %v3160_v17  ;;  %v1094_v43 = vmul.f32 %v3947_v5, %v2763_v49  ;;  %v3182_v13 = vld [vmem:[#allocation2 + $0x1f1] sm:$0xff] }
 0x146   : > { %v932_v45 = vadd.f32 %v900_v62, %v834_v23  ;;  %v1192_v41 = vmul.f32 %v2775_v57, %v3164_v3  ;;  %v713_v26 = vadd.f32 %v681_v20, %v616_v31  ;;  %v3948_v21 = vld [vmem:[#allocation49_spill] sm:$0xff]  ;;  %v3949_v54 = vld [vmem:[#allocation50_spill] sm:$0xff]  ;;  %v624_v17 = vmul.f32 %v3950_v8, %v2750_v40 }
 0x147   : > { %v876_v52 = vmul.f32 %v3948_v21, %v2759_v47  ;;  %v1401_v1 = vadd.f32 %v1369_v61, %v1304_v55  ;;  %v1216_v35 = vadd.f32 %v1184_v37, %v1118_v51  ;;  %v973_v15 = vmul.f32 %v3949_v54, %v2761_v48  ;;  %v3190_v5 = vld [vmem:[#allocation2 + $0x6f] sm:$0xff] }
 0x148   : > { %v1029_v62 = vadd.f32 %v997_v60, %v932_v45  ;;  %v810_v23 = vadd.f32 %v778_v36, %v713_v26  ;;  %v689_v3 = vmul.f32 %v3006_v53, %v2752_v42  ;;  %v786_v20 = vmul.f32 %v3018_v11, %v2754_v44  ;;  %v3202_v51 = vld [vmem:[#allocation2 + $0x70] sm:$0xff] }
 0x149   : > { %1485 = vmatmul.f32.gmra.mxu1 %v1401_v1  ;;  %v1313_v31 = vadd.f32 %v1281_v39, %v1216_v35  ;;  %v1289_v61 = vmul.f32 %v2779_v59, %v3180_v4  ;;  %v1386_v37 = vmul.f32 %v2788_v0, %v3182_v13  ;;  %v1070_v60 = vmul.f32 %v3014_v50, %v2763_v49 }
 0x14a   : > { %v1126_v36 = vadd.f32 %v1094_v43, %v1029_v62  ;;  %v908_v55 = vadd.f32 %v876_v52, %v810_v23  ;;  %v721_v45 = vadd.f32 %v689_v3, %v624_v17  ;;  %v884_v53 = vmul.f32 %v3020_v34, %v2759_v47  ;;  %v3212_v43 = vld [vmem:[#allocation2 + $0x71] sm:$0xff] }
 0x14b   : > { %v1410_v11 = vadd.f32 %v1378_v38, %v1313_v31  ;;  %v1168_v39 = vmul.f32 %v2775_v57, %v3190_v5  ;;  %v981_v26 = vmul.f32 %v3026_v33, %v2761_v48  ;;  %v633_v1 = vmul.f32 %v2773_v56, %v2750_v40  ;;  %v3214_v62 = vld [vmem:[#allocation2 + $0xef] sm:$0xff] }
 0x14c   : > { %v1224_v35 = vadd.f32 %v1192_v41, %v1126_v36  ;;  %v1005_v8 = vadd.f32 %v973_v15, %v908_v55  ;;  %v818_v52 = vadd.f32 %v786_v20, %v721_v45  ;;  %v698_v17 = vmul.f32 %v2777_v58, %v2752_v42  ;;  %v3226_v31 = vld [vmem:[#allocation2 + $0xf0] sm:$0xff] }
 0x14d   : > { %1512 = vmatmul.f32.gmra.mxu2 %v1410_v11  ;;  %v1265_v3 = vmul.f32 %v2779_v59, %v3202_v51  ;;  %v1078_v38 = vmul.f32 %v3046_v12, %v2763_v49  ;;  %v795_v56 = vmul.f32 %v2800_v6, %v2754_v44  ;;  %v893_v41 = vmul.f32 %v3048_v19, %v2759_v47  ;;  %v3228_v36 = vld [vmem:[#allocation2 + $0xf1] sm:$0xff] }
 0x14e   : > { %v1321_v15 = vadd.f32 %v1289_v61, %v1224_v35  ;;  %v1102_v23 = vadd.f32 %v1070_v60, %v1005_v8  ;;  %v916_v20 = vadd.f32 %v884_v53, %v818_v52  ;;  %v730_v58 = vadd.f32 %v698_v17, %v633_v1 }
 0x14f   : > { %v1362_v55 = vmul.f32 %v2788_v0, %v3212_v43  ;;  %v1176_v45 = vmul.f32 %v2775_v57, %v3214_v62  ;;  %v990_v6 = vmul.f32 %v3058_v2, %v2761_v48  ;;  %v641_v11 = vmul.f32 %v2826_v24, %v2750_v40 }
 0x150   : > { %v1418_v61 = vadd.f32 %v1386_v37, %v1321_v15  ;;  %v1200_v60 = vadd.f32 %v1168_v39, %v1102_v23  ;;  %v1013_v53 = vadd.f32 %v981_v26, %v916_v20  ;;  %v827_v35 = vadd.f32 %v795_v56, %v730_v58  ;;  %v3951_v39 = vld [vmem:[#allocation24_spill] sm:$0xff]  ;;  %v3952_v56 = vld [vmem:[#allocation25_spill] sm:$0xff] }
 0x151   : > { %v1273_v8 = vmul.f32 %v2779_v59, %v3226_v31  ;;  %v1370_v1 = vmul.f32 %v2788_v0, %v3228_v36  ;;  %v706_v52 = vmul.f32 %v2828_v25, %v2752_v42  ;;  %v803_v17 = vmul.f32 %v2836_v32, %v2754_v44 }
 0x152   : > { %1536 = vmatmul.f32.gmra.mxu3 %v1418_v61  ;;  %v1297_v2 = vadd.f32 %v1265_v3, %v1200_v60  ;;  %v1110_v19 = vadd.f32 %v1078_v38, %v1013_v53  ;;  %v925_v24 = vadd.f32 %v893_v41, %v827_v35  ;;  %v1087_v37 = vmul.f32 %v3066_v63, %v2763_v49  ;;  %v3254_v61 = vld [vmem:[#allocation2 + $0x207] sm:$0xff] }
 0x153   : > { %v1185_v26 = vmul.f32 %v2775_v57, %v3951_v39  ;;  %v1282_v15 = vmul.f32 %v2779_v59, %v3952_v56  ;;  %v738_v23 = vadd.f32 %v706_v52, %v641_v11  ;;  %v901_v25 = vmul.f32 %v3068_v22, %v2759_v47  ;;  %v3270_v35 = vld [vmem:[#allocation2 + $0x208] sm:$0xff] }
 0x154   : > { %v1394_v20 = vadd.f32 %v1362_v55, %v1297_v2  ;;  %v1208_v58 = vadd.f32 %v1176_v45, %v1110_v19  ;;  %v1022_v32 = vadd.f32 %v990_v6, %v925_v24  ;;  %v617_v3 = vmul.f32 %v2866_v14, %v2750_v40  ;;  %v3953_v19 = vld [vmem:[#allocation26_spill] sm:$0xff]  ;;  %v3272_v52 = vld [vmem:[#allocation2 + $0x209] sm:$0xff] }
 0x155   : > { %v835_v38 = vadd.f32 %v803_v17, %v738_v23  ;;  %v998_v41 = vmul.f32 %v3084_v29, %v2761_v48  ;;  %v682_v60 = vmul.f32 %v2868_v16, %v2752_v42  ;;  %v779_v11 = vmul.f32 %v2880_v27, %v2754_v44  ;;  %3954 = vst [vmem:[#allocation40_spill] sm:$0xff] %v3272_v52 }
 0x156   : > { %1464 = vmatmul.f32.gmra.mxu0 %v1394_v20  ;;  %v1305_v53 = vadd.f32 %v1273_v8, %v1208_v58  ;;  %v1119_v2 = vadd.f32 %v1087_v37, %v1022_v32  ;;  %v1379_v55 = vmul.f32 %v2788_v0, %v3953_v19  ;;  %v1095_v45 = vmul.f32 %v3086_v28, %v2763_v49  ;;  %v3956_v32 = vld [vmem:[#allocation54_spill] sm:$0xff] }
 0x157   : > { %v933_v14 = vadd.f32 %v901_v25, %v835_v38  ;;  %v1193_v6 = vmul.f32 %v2775_v57, %v3254_v61  ;;  %v714_v16 = vadd.f32 %v682_v60, %v617_v3  ;;  %v877_v27 = vmul.f32 %v3092_v18, %v2759_v47  ;;  %v3955_v25 = vld [vmem:[#allocation30_spill] sm:$0xff]  ;;  %v3957_v60 = vld [vmem:[#allocation55_spill] sm:$0xff] }
 0x158   : > { %v1402_v8 = vadd.f32 %v1370_v1, %v1305_v53  ;;  %v1217_v17 = vadd.f32 %v1185_v26, %v1119_v2  ;;  %v974_v24 = vmul.f32 %v3106_v10, %v2761_v48  ;;  %v625_v37 = vmul.f32 %v2897_v7, %v2750_v40  ;;  %v3958_v53 = vld [vmem:[#allocation27_spill] sm:$0xff] }
 0x159   : > { %v1030_v39 = vadd.f32 %v998_v41, %v933_v14  ;;  %v811_v56 = vadd.f32 %v779_v11, %v714_v16  ;;  %v690_v23 = vmul.f32 %v2904_v9, %v2752_v42  ;;  %v787_v20 = vmul.f32 %v3955_v25, %v2754_v44  ;;  %v3960_v14 = vld [vmem:[#allocation35_spill] sm:$0xff] }
 0x15a   : > { %1488 = vmatmul.f32.gmra.mxu1 %v1402_v8  ;;  %v1314_v58 = vadd.f32 %v1282_v15, %v1217_v17  ;;  %v1290_v1 = vmul.f32 %v2779_v59, %v3270_v35  ;;  %v1387_v26 = vmul.f32 %v2788_v0, %v3272_v52  ;;  %v1071_v3 = vmul.f32 %v3956_v32, %v2763_v49  ;;  %v3959_v15 = vld [vmem:[#allocation32_spill] sm:$0xff] }
 0x15b   : > { %v1127_v7 = vadd.f32 %v1095_v45, %v1030_v39  ;;  %v909_v38 = vadd.f32 %v877_v27, %v811_v56  ;;  %v722_v41 = vadd.f32 %v690_v23, %v625_v37  ;;  %v885_v9 = vmul.f32 %v3957_v60, %v2759_v47  ;;  %v3298_v52 = vld [vmem:[#allocation2 + $0x107] sm:$0xff] }
 0x15c   : > { %v1411_v11 = vadd.f32 %v1379_v55, %v1314_v58  ;;  %v1169_v2 = vmul.f32 %v2775_v57, %v3958_v53  ;;  %v982_v19 = vmul.f32 %v3959_v15, %v2761_v48  ;;  %v634_v16 = vmul.f32 %v3960_v14, %v2750_v40  ;;  %3961 = vst [vmem:[#allocation41_spill] sm:$0xff] %v3298_v52  ;;  %v3962_v45 = vld [vmem:[#allocation36_spill] sm:$0xff]  ;;  %v3965_v23 = vld [vmem:[#allocation37_spill] sm:$0xff] }
 0x15d   : > { %v1225_v8 = vadd.f32 %v1193_v6, %v1127_v7  ;;  %v1006_v17 = vadd.f32 %v974_v24, %v909_v38  ;;  %v819_v25 = vadd.f32 %v787_v20, %v722_v41  ;;  %v699_v27 = vmul.f32 %v3962_v45, %v2752_v42  ;;  %v3963_v37 = vld [vmem:[#allocation28_spill] sm:$0xff]  ;;  %v3966_v53 = vld [vmem:[#allocation57_spill] sm:$0xff] }
 0x15e   : > { %1515 = vmatmul.f32.gmra.mxu2 %v1411_v11  ;;  %v1266_v55 = vmul.f32 %v2779_v59, %v3963_v37  ;;  %v3964_v39 = vld [vmem:[#allocation56_spill] sm:$0xff]  ;;  %v796_v58 = vmul.f32 %v3965_v23, %v2754_v44  ;;  %v894_v6 = vmul.f32 %v3966_v53, %v2759_v47  ;;  %v3967_v14 = vld [vmem:[#allocation29_spill] sm:$0xff]  ;;  %v1177_v37 = vmul.f32 %v2775_v57, %v3298_v52 }
 0x15f   : > { %v1079_v56 = vmul.f32 %v3964_v39, %v2763_v49  ;;  %v1322_v24 = vadd.f32 %v1290_v1, %v1225_v8  ;;  %v1103_v20 = vadd.f32 %v1071_v3, %v1006_v17  ;;  %v917_v7 = vadd.f32 %v885_v9, %v819_v25  ;;  %v3310_v38 = vld [vmem:[#allocation2 + $0x108] sm:$0xff]  ;;  %v3968_v39 = vld [vmem:[#allocation58_spill] sm:$0xff] }
 0x160   : > { %v3312_v41 = vld [vmem:[#allocation2 + $0x109] sm:$0xff]  ;;  %v731_v11 = vadd.f32 %v699_v27, %v634_v16  ;;  %v1363_v45 = vmul.f32 %v2788_v0, %v3967_v14  ;;  %v991_v23 = vmul.f32 %v3968_v39, %v2761_v48  ;;  %v642_v53 = vmul.f32 %v3942_v30, %v2750_v40 }
 0x161   : > { %v1419_v1 = vadd.f32 %v1387_v26, %v1322_v24  ;;  %v1201_v3 = vadd.f32 %v1169_v2, %v1103_v20  ;;  %v1014_v9 = vadd.f32 %v982_v19, %v917_v7  ;;  %v1274_v17 = vmul.f32 %v2779_v59, %v3310_v38  ;;  %v3969_v27 = vld [vmem:[#allocation44_spill] sm:$0xff]  ;;  %v3970_v26 = vld [vmem:[#allocation38_spill] sm:$0xff]  ;;  %v3971_v19 = vld [vmem:[#allocation31_spill] sm:$0xff] }
 0x162   : > { %v828_v8 = vadd.f32 %v796_v58, %v731_v11  ;;  %v1371_v16 = vmul.f32 %v2788_v0, %v3312_v41  ;;  %v707_v25 = vmul.f32 %v3945_v46, %v2752_v42  ;;  %v804_v14 = vmul.f32 %v3969_v27, %v2754_v44  ;;  %v3972_v24 = vld [vmem:[#allocation33_spill] sm:$0xff]  ;;  %v3973_v46 = vld [vmem:[#allocation39_spill] sm:$0xff] }
 0x163   : > { %1539 = vmatmul.f32.gmra.mxu3 %v1419_v1  ;;  %v1298_v39 = vadd.f32 %v1266_v55, %v1201_v3  ;;  %v1111_v52 = vadd.f32 %v1079_v56, %v1014_v9  ;;  %v1088_v2 = vmul.f32 %v3970_v26, %v2763_v49  ;;  %v1186_v58 = vmul.f32 %v2775_v57, %v3971_v19  ;;  %v3338_v55 = vld [vmem:[#allocation2 + $0x20f] sm:$0xff] }
 0x164   : > { %v926_v30 = vadd.f32 %v894_v6, %v828_v8  ;;  %v1283_v0 = vmul.f32 %v2779_v59, %v3972_v24  ;;  %v739_v20 = vadd.f32 %v707_v25, %v642_v53  ;;  %v902_v7 = vmul.f32 %v3973_v46, %v2759_v47 }
 0x165   : > { %v1395_v11 = vadd.f32 %v1363_v45, %v1298_v39  ;;  %v1209_v27 = vadd.f32 %v1177_v37, %v1111_v52  ;;  %v618_v56 = vmul.f32 %v3948_v21, %v2750_v40  ;;  %v999_v3 = vmul.f32 %v3180_v4, %v2761_v48  ;;  %v3349_v52 = vld [vmem:[%s2565_s28 + $0x8] ss:$0 sm:$0xff]  ;;  %v3974_v45 = vld [vmem:[#allocation34_spill] sm:$0xff] }
 0x166   : > { %v1023_v1 = vadd.f32 %v991_v23, %v926_v30  ;;  %v836_v6 = vadd.f32 %v804_v14, %v739_v20  ;;  %v683_v9 = vmul.f32 %v3949_v54, %v2752_v42  ;;  %v780_v53 = vmul.f32 %v3014_v50, %v2754_v44  ;;  %v3357_v14 = vld [vmem:[#allocation2 + $0x210] sm:$0xff] }
 0x167   : > { %1467 = vmatmul.f32.gmra.mxu0 %v1395_v11  ;;  %v1306_v8 = vadd.f32 %v1274_v17, %v1209_v27  ;;  %v1380_v37 = vmul.f32 %v3349_v52, %v3974_v45  ;;  %v1096_v21 = vmul.f32 %v3182_v13, %v2763_v49  ;;  %v1194_v25 = vmul.f32 %v2775_v57, %v3338_v55  ;;  %v3359_v54 = vld [vmem:[#allocation2 + $0x211] sm:$0xff] }
 0x168   : > { %v1120_v39 = vadd.f32 %v1088_v2, %v1023_v1  ;;  %v934_v23 = vadd.f32 %v902_v7, %v836_v6  ;;  %v715_v50 = vadd.f32 %v683_v9, %v618_v56  ;;  %v878_v17 = vmul.f32 %v3190_v5, %v2759_v47  ;;  %v862_v9 = vld [vmem:[#allocation2 + $0x187] sm:$0xff] }
 0x169   : > { %v1403_v30 = vadd.f32 %v1371_v16, %v1306_v8  ;;  %v975_v19 = vmul.f32 %v3202_v51, %v2761_v48  ;;  %v626_v24 = vmul.f32 %v3020_v34, %v2750_v40  ;;  %v691_v11 = vmul.f32 %v3026_v33, %v2752_v42 }
 0x16a   : > { %v1218_v2 = vadd.f32 %v1186_v58, %v1120_v39  ;;  %v1031_v20 = vadd.f32 %v999_v3, %v934_v23  ;;  %v812_v7 = vadd.f32 %v780_v53, %v715_v50  ;;  %v788_v27 = vmul.f32 %v3046_v12, %v2754_v44  ;;  %v3975_v12 = vld [vmem:[#allocation45_spill] sm:$0xff]  ;;  %v3976_v39 = vld [vmem:[#allocation52_spill] sm:$0xff] }
 0x16b   : > { %1491 = vmatmul.f32.gmra.mxu1 %v1403_v30  ;;  %v1291_v16 = vmul.f32 %v2779_v59, %v3357_v14  ;;  %v1388_v58 = vmul.f32 %v3349_v52, %v3359_v54  ;;  %v1072_v56 = vmul.f32 %v3212_v43, %v2763_v49  ;;  %v723_v3 = vadd.f32 %v691_v11, %v626_v24  ;;  %v959_v24 = vld [vmem:[#allocation2 + $0x188] sm:$0xff] }
 0x16c   : > { %v1315_v1 = vadd.f32 %v1283_v0, %v1218_v2  ;;  %v1128_v34 = vadd.f32 %v1096_v21, %v1031_v20  ;;  %v910_v6 = vadd.f32 %v878_v17, %v812_v7  ;;  %v886_v33 = vmul.f32 %v3214_v62, %v2759_v47  ;;  %v3385_v21 = vld [vmem:[#allocation2 + $0x10f] sm:$0xff] }
 0x16d   : > { %v1170_v0 = vmul.f32 %v2775_v57, %v3975_v12  ;;  %v983_v8 = vmul.f32 %v3226_v31, %v2761_v48  ;;  %v635_v45 = vmul.f32 %v3976_v39, %v2750_v40  ;;  %v820_v30 = vadd.f32 %v788_v27, %v723_v3  ;;  %v3977_v17 = vld [vmem:[#allocation53_spill] sm:$0xff] }
 0x16e   : > { %v1412_v53 = vadd.f32 %v1380_v37, %v1315_v1  ;;  %v1226_v23 = vadd.f32 %v1194_v25, %v1128_v34  ;;  %v1007_v50 = vadd.f32 %v975_v19, %v910_v6  ;;  %v700_v2 = vmul.f32 %v3977_v17, %v2752_v42  ;;  %v3978_v37 = vld [vmem:[#allocation47_spill] sm:$0xff]  ;;  %v3396_v34 = vld [vmem:[#allocation2 + $0x110] sm:$0xff] }
 0x16f   : > { %v1267_v20 = vmul.f32 %v2779_v59, %v3978_v37  ;;  %v1080_v7 = vmul.f32 %v3228_v36, %v2763_v49  ;;  %v797_v11 = vmul.f32 %v3066_v63, %v2754_v44  ;;  %v895_v25 = vmul.f32 %v2759_v47, %v862_v9  ;;  %3979 = vst [vmem:[#allocation43_spill] sm:$0xff] %v3396_v34  ;;  %v3398_v6 = vld [vmem:[#allocation2 + $0x111] sm:$0xff]  ;;  %v1056_v37 = vld [vmem:[#allocation2 + $0x189] sm:$0xff] }
 0x170   : > { %1518 = vmatmul.f32.gmra.mxu2 %v1412_v53  ;;  %v1323_v19 = vadd.f32 %v1291_v16, %v1226_v23  ;;  %v1104_v27 = vadd.f32 %v1072_v56, %v1007_v50  ;;  %v918_v1 = vadd.f32 %v886_v33, %v820_v30  ;;  %3980 = vst [vmem:[#allocation42_spill] sm:$0xff] %v3398_v6  ;;  %v3981_v53 = vld [vmem:[#allocation48_spill] sm:$0xff] }
 0x171   : > { %v732_v3 = vadd.f32 %v700_v2, %v635_v45  ;;  %v1364_v12 = vmul.f32 %v3349_v52, %v3981_v53  ;;  %v1178_v39 = vmul.f32 %v2775_v57, %v3385_v21  ;;  %v992_v17 = vmul.f32 %v2761_v48, %v959_v24  ;;  %v1154_v23 = vld [vmem:[#allocation2 + $0x1a7] sm:$0xff] }
 0x172   : > { %v643_v63 = vmul.f32 %v3068_v22, %v2750_v40  ;;  %v1420_v16 = vadd.f32 %v1388_v58, %v1323_v19  ;;  %v1202_v56 = vadd.f32 %v1170_v0, %v1104_v27  ;;  %v1015_v33 = vadd.f32 %v983_v8, %v918_v1  ;;  %v1251_v50 = vld [vmem:[#allocation2 + $0x1a8] sm:$0xff] }
 0x173   : > { %v829_v9 = vadd.f32 %v797_v11, %v732_v3  ;;  %v1275_v45 = vmul.f32 %v2779_v59, %v3396_v34  ;;  %v1372_v30 = vmul.f32 %v3349_v52, %v3398_v6  ;;  %v708_v2 = vmul.f32 %v3084_v29, %v2752_v42  ;;  %v1348_v27 = vld [vmem:[#allocation2 + $0x1a9] sm:$0xff] }
 0x174   : > { %v805_v24 = vmul.f32 %v3086_v28, %v2754_v44  ;;  %1542 = vmatmul.f32.gmra.mxu3 %v1420_v16  ;;  %v1299_v22 = vadd.f32 %v1267_v20, %v1202_v56  ;;  %v1112_v58 = vadd.f32 %v1080_v7, %v1015_v33  ;;  %v1089_v8 = vmul.f32 %v2763_v49, %v1056_v37  ;;  %v1162_v34 = vld [vmem:[#allocation2 + $0x227] sm:$0xff] }
 0x175   : > { %v927_v0 = vadd.f32 %v895_v25, %v829_v9  ;;  %v1187_v11 = vmul.f32 %v2775_v57, %v1154_v23  ;;  %v1284_v19 = vmul.f32 %v2779_v59, %v1251_v50  ;;  %v740_v1 = vadd.f32 %v708_v2, %v643_v63  ;;  %v846_v20 = vld [vmem:[#allocation2 + $0x87] sm:$0xff] }
 0x176   : > { %v903_v3 = vmul.f32 %v3254_v61, %v2759_v47  ;;  %v1396_v53 = vadd.f32 %v1364_v12, %v1299_v22  ;;  %v1210_v29 = vadd.f32 %v1178_v39, %v1112_v58  ;;  %v619_v28 = vmul.f32 %v3092_v18, %v2750_v40  ;;  %v943_v16 = vld [vmem:[#allocation2 + $0x88] sm:$0xff] }
 0x177   : > { %v1024_v6 = vadd.f32 %v992_v17, %v927_v0  ;;  %v837_v7 = vadd.f32 %v805_v24, %v740_v1  ;;  %v1000_v25 = vmul.f32 %v3270_v35, %v2761_v48  ;;  %v684_v37 = vmul.f32 %v3106_v10, %v2752_v42  ;;  %v3982_v17 = vld [vmem:[#allocation40_spill] sm:$0xff] }
 0x178   : > { %v781_v63 = vmul.f32 %v3956_v32, %v2754_v44  ;;  %1470 = vmatmul.f32.gmra.mxu0 %v1396_v53  ;;  %v1307_v61 = vadd.f32 %v1275_v45, %v1210_v29  ;;  %v1381_v39 = vmul.f32 %v3349_v52, %v1348_v27  ;;  %v1097_v18 = vmul.f32 %v3982_v17, %v2763_v49  ;;  %v1259_v9 = vld [vmem:[#allocation2 + $0x228] sm:$0xff] }
 0x179   : > { %v1121_v12 = vadd.f32 %v1089_v8, %v1024_v6  ;;  %v935_v56 = vadd.f32 %v903_v3, %v837_v7  ;;  %v1195_v33 = vmul.f32 %v2775_v57, %v1162_v34  ;;  %v1356_v35 = vld [vmem:[#allocation2 + $0x229] sm:$0xff]  ;;  %v716_v23 = vadd.f32 %v684_v37, %v619_v28 }
 0x17a   : > { %v879_v10 = vmul.f32 %v2759_v47, %v846_v20  ;;  %v1040_v50 = vld [vmem:[#allocation2 + $0x89] sm:$0xff]  ;;  %v1404_v2 = vadd.f32 %v1372_v30, %v1307_v61  ;;  %v976_v24 = vmul.f32 %v2761_v48, %v943_v16  ;;  %v627_v6 = vmul.f32 %v3957_v60, %v2750_v40 }
 0x17b   : > { %v1219_v32 = vadd.f32 %v1187_v11, %v1121_v12  ;;  %v1032_v45 = vadd.f32 %v1000_v25, %v935_v56  ;;  %v813_v22 = vadd.f32 %v781_v63, %v716_v23  ;;  %v1138_v58 = vld [vmem:[#allocation2 + $0xa7] sm:$0xff]  ;;  %v692_v0 = vmul.f32 %v3959_v15, %v2752_v42  ;;  %v863_v7 = vld [vmem:[#allocation2 + $0x18f] sm:$0xff] }
 0x17c   : > { %v3983_v34 = vld [vmem:[#allocation56_spill] sm:$0xff]  ;;  %1494 = vmatmul.f32.gmra.mxu1 %v1404_v2  ;;  %v1292_v1 = vmul.f32 %v2779_v59, %v1259_v9  ;;  %v1389_v30 = vmul.f32 %v3349_v52, %v1356_v35  ;;  %v1073_v11 = vmul.f32 %v2763_v49, %v1040_v50  ;;  %v3984_v28 = vld [vmem:[#allocation41_spill] sm:$0xff]  ;;  %v1171_v25 = vmul.f32 %v2775_v57, %v1138_v58  ;;  %v3986_v56 = vld [vmem:[#allocation58_spill] sm:$0xff] }
 0x17d   : > { %v789_v8 = vmul.f32 %v3983_v34, %v2754_v44  ;;  %v1316_v27 = vadd.f32 %v1284_v19, %v1219_v32  ;;  %v1129_v3 = vadd.f32 %v1097_v18, %v1032_v45  ;;  %v911_v53 = vadd.f32 %v879_v10, %v813_v22  ;;  %v1235_v60 = vld [vmem:[#allocation2 + $0xa8] sm:$0xff]  ;;  %v960_v35 = vld [vmem:[#allocation2 + $0x190] sm:$0xff] }
 0x17e   : > { %v724_v29 = vadd.f32 %v692_v0, %v627_v6  ;;  %v887_v20 = vmul.f32 %v3984_v28, %v2759_v47  ;;  %v984_v19 = vmul.f32 %v3310_v38, %v2761_v48  ;;  %v3985_v37 = vld [vmem:[#allocation57_spill] sm:$0xff]  ;;  %v701_v9 = vmul.f32 %v3986_v56, %v2752_v42 }
 0x17f   : > { %v1413_v15 = vadd.f32 %v1381_v39, %v1316_v27  ;;  %v636_v63 = vmul.f32 %v3985_v37, %v2750_v40  ;;  %v1227_v16 = vadd.f32 %v1195_v33, %v1129_v3  ;;  %v1008_v61 = vadd.f32 %v976_v24, %v911_v53  ;;  %v1332_v12 = vld [vmem:[#allocation2 + $0xa9] sm:$0xff]  ;;  %v1057_v0 = vld [vmem:[#allocation2 + $0x191] sm:$0xff] }
 0x180   : > { %v821_v17 = vadd.f32 %v789_v8, %v724_v29  ;;  %v1146_v18 = vld [vmem:[#allocation2 + $0x127] sm:$0xff]  ;;  %v1268_v39 = vmul.f32 %v2779_v59, %v1235_v60  ;;  %v1081_v23 = vmul.f32 %v3312_v41, %v2763_v49  ;;  %v798_v38 = vmul.f32 %v3970_v26, %v2754_v44 }
 0x181   : > { %1521 = vmatmul.f32.gmra.mxu2 %v1413_v15  ;;  %v896_v10 = vmul.f32 %v2759_v47, %v863_v7  ;;  %v1324_v33 = vadd.f32 %v1292_v1, %v1227_v16  ;;  %v1105_v50 = vadd.f32 %v1073_v11, %v1008_v61  ;;  %v1243_v32 = vld [vmem:[#allocation2 + $0x128] sm:$0xff]  ;;  %v733_v6 = vadd.f32 %v701_v9, %v636_v63  ;;  %v1252_v11 = vld [vmem:[#allocation2 + $0x1b0] sm:$0xff] }
 0x182   : > { %v919_v2 = vadd.f32 %v887_v20, %v821_v17  ;;  %v1340_v24 = vld [vmem:[#allocation2 + $0x129] sm:$0xff]  ;;  %v1365_v45 = vmul.f32 %v3349_v52, %v1332_v12  ;;  %v1179_v22 = vmul.f32 %v2775_v57, %v1146_v18  ;;  %v993_v58 = vmul.f32 %v2761_v48, %v960_v35 }
 0x183   : > { %v644_v41 = vmul.f32 %v3973_v46, %v2750_v40  ;;  %v1421_v34 = vadd.f32 %v1389_v30, %v1324_v33  ;;  %v1203_v26 = vadd.f32 %v1171_v25, %v1105_v50  ;;  %v830_v27 = vadd.f32 %v798_v38, %v733_v6  ;;  %v1155_v1 = vld [vmem:[#allocation2 + $0x1af] sm:$0xff] }
 0x184   : > { %v1016_v8 = vadd.f32 %v984_v19, %v919_v2  ;;  %v1276_v3 = vmul.f32 %v2779_v59, %v1243_v32  ;;  %v1373_v53 = vmul.f32 %v3349_v52, %v1340_v24  ;;  %v709_v60 = vmul.f32 %v3180_v4, %v2752_v42  ;;  %v1349_v25 = vld [vmem:[#allocation2 + $0x1b1] sm:$0xff] }
 0x185   : > { %v806_v29 = vmul.f32 %v3182_v13, %v2754_v44  ;;  %1545 = vmatmul.f32.gmra.mxu3 %v1421_v34  ;;  %v1300_v28 = vadd.f32 %v1268_v39, %v1203_v26  ;;  %v928_v46 = vadd.f32 %v896_v10, %v830_v27  ;;  %v1090_v30 = vmul.f32 %v2763_v49, %v1057_v0  ;;  %v1163_v61 = vld [vmem:[#allocation2 + $0x22f] sm:$0xff] }
 0x186   : > { %v1113_v20 = vadd.f32 %v1081_v23, %v1016_v8  ;;  %v1188_v7 = vmul.f32 %v2775_v57, %v1155_v1  ;;  %v1285_v15 = vmul.f32 %v2779_v59, %v1252_v11  ;;  %v741_v19 = vadd.f32 %v709_v60, %v644_v41  ;;  %v847_v12 = vld [vmem:[#allocation2 + $0x8f] sm:$0xff]  ;;  %v3987_v60 = vld [vmem:[#allocation43_spill] sm:$0xff] }
 0x187   : > { %v904_v37 = vmul.f32 %v3338_v55, %v2759_v47  ;;  %v1397_v63 = vadd.f32 %v1365_v45, %v1300_v28  ;;  %v1025_v16 = vadd.f32 %v993_v58, %v928_v46  ;;  %v620_v13 = vmul.f32 %v3190_v5, %v2750_v40  ;;  %v944_v35 = vld [vmem:[#allocation2 + $0x90] sm:$0xff] }
 0x188   : > { %v1211_v4 = vadd.f32 %v1179_v22, %v1113_v20  ;;  %v838_v17 = vadd.f32 %v806_v29, %v741_v19  ;;  %v1001_v18 = vmul.f32 %v3357_v14, %v2761_v48  ;;  %v685_v56 = vmul.f32 %v3202_v51, %v2752_v42  ;;  %v1260_v33 = vld [vmem:[#allocation2 + $0x230] sm:$0xff] }
 0x189   : > { %v782_v9 = vmul.f32 %v3212_v43, %v2754_v44  ;;  %1473 = vmatmul.f32.gmra.mxu0 %v1397_v63  ;;  %v1122_v39 = vadd.f32 %v1090_v30, %v1025_v16  ;;  %v1382_v23 = vmul.f32 %v3349_v52, %v1349_v25  ;;  %v1098_v5 = vmul.f32 %v3359_v54, %v2763_v49  ;;  %v1041_v51 = vld [vmem:[#allocation2 + $0x91] sm:$0xff] }
 0x18a   : > { %v1308_v55 = vadd.f32 %v1276_v3, %v1211_v4  ;;  %v936_v38 = vadd.f32 %v904_v37, %v838_v17  ;;  %v1196_v10 = vmul.f32 %v2775_v57, %v1163_v61  ;;  %v717_v14 = vadd.f32 %v685_v56, %v620_v13  ;;  %v1357_v45 = vld [vmem:[#allocation2 + $0x231] sm:$0xff]  ;;  %v3510_v56 = vld [vmem:[%s2570_s4] ss:$0 sm:$0xff] }
 0x18b   : > { %v880_v50 = vmul.f32 %v2759_v47, %v847_v12  ;;  %v1220_v32 = vadd.f32 %v1188_v7, %v1122_v39  ;;  %v977_v43 = vmul.f32 %v2761_v48, %v944_v35  ;;  %v628_v24 = vmul.f32 %v3214_v62, %v2750_v40  ;;  %v1139_v58 = vld [vmem:[#allocation2 + $0xaf] sm:$0xff] }
 0x18c   : > { %v1405_v2 = vadd.f32 %v1373_v53, %v1308_v55  ;;  %v1033_v6 = vadd.f32 %v1001_v18, %v936_v38  ;;  %v814_v22 = vadd.f32 %v782_v9, %v717_v14  ;;  %v693_v54 = vmul.f32 %v3226_v31, %v2752_v42  ;;  %v1236_v1 = vld [vmem:[#allocation2 + $0xb0] sm:$0xff] }
 0x18d   : > { %v790_v0 = vmul.f32 %v3228_v36, %v2754_v44  ;;  %v1317_v41 = vadd.f32 %v1285_v15, %v1220_v32  ;;  %v1293_v34 = vmul.f32 %v2779_v59, %v1260_v33  ;;  %v1074_v26 = vmul.f32 %v2763_v49, %v1041_v51  ;;  %v1333_v36 = vld [vmem:[#allocation2 + $0xb1] sm:$0xff] }
 0x18e   : > { %1497 = vmatmul.f32.gmra.mxu1 %v1405_v2  ;;  %v1130_v8 = vadd.f32 %v1098_v5, %v1033_v6  ;;  %v912_v27 = vadd.f32 %v880_v50, %v814_v22  ;;  %v725_v40 = vadd.f32 %v693_v54, %v628_v24  ;;  %v888_v62 = vmul.f32 %v3385_v21, %v2759_v47  ;;  %v1147_v20 = vld [vmem:[#allocation2 + $0x12f] sm:$0xff] }
 0x18f   : > { %v1414_v11 = vadd.f32 %v1382_v23, %v1317_v41  ;;  %v1390_v3 = vmul.f32 %v3349_v52, %v1357_v45  ;;  %v1172_v42 = vmul.f32 %v2775_v57, %v1139_v58  ;;  %v985_v29 = vmul.f32 %v3987_v60, %v2761_v48  ;;  %v3988_v47 = vld [vmem:[#allocation42_spill] sm:$0xff] }
 0x190   : > { %v1228_v31 = vadd.f32 %v1196_v10, %v1130_v8  ;;  %v1009_v44 = vadd.f32 %v977_v43, %v912_v27  ;;  %v822_v53 = vadd.f32 %v790_v0, %v725_v40  ;;  %v1269_v28 = vmul.f32 %v2779_v59, %v1236_v1  ;;  %v1244_v25 = vld [vmem:[#allocation2 + $0x130] sm:$0xff] }
 0x191   : > { %1524 = vmatmul.f32.gmra.mxu2 %v1414_v11  ;;  %v1082_v21 = vmul.f32 %v3988_v47, %v2763_v49  ;;  %v1366_v15 = vmul.f32 %v3349_v52, %v1333_v36  ;;  %v1180_v4 = vmul.f32 %v2775_v57, %v1147_v20  ;;  %v1341_v48 = vld [vmem:[#allocation2 + $0x131] sm:$0xff]  ;;  %v1277_v13 = vmul.f32 %v2779_v59, %v1244_v25 }
 0x192   : > { %v1325_v46 = vadd.f32 %v1293_v34, %v1228_v31  ;;  %v1106_v30 = vadd.f32 %v1074_v26, %v1009_v44  ;;  %v920_v7 = vadd.f32 %v888_v62, %v822_v53  ;;  %v1374_v18 = vmul.f32 %v3349_v52, %v1341_v48 }
 0x194   : > { %v1422_v19 = vadd.f32 %v1390_v3, %v1325_v46  ;;  %v1204_v37 = vadd.f32 %v1172_v42, %v1106_v30  ;;  %v1017_v63 = vadd.f32 %v985_v29, %v920_v7 }
 0x196   : > { %1548 = vmatmul.f32.gmra.mxu3 %v1422_v19  ;;  %v1301_v16 = vadd.f32 %v1269_v28, %v1204_v37  ;;  %v1114_v61 = vadd.f32 %v1082_v21, %v1017_v63 }
 0x198   : > { %v1398_v12 = vadd.f32 %v1366_v15, %v1301_v16  ;;  %v1212_v17 = vadd.f32 %v1180_v4, %v1114_v61  ;;  %v1456_v35 = vpop.f32.mrf.mxu0 }
 0x199   : > { %v3513_v55 = vadd.f32 %v3510_v56, %v1456_v35 }
 0x19a   : > { %1476 = vmatmul.f32.gmra.mxu0 %v1398_v12  ;;  %v1309_v49 = vadd.f32 %v1277_v13, %v1212_v17 }
 0x19c   : > { %v1406_v9 = vadd.f32 %v1374_v18, %v1309_v49  ;;  %v1504_v57 = vpop.f32.mrf.mxu2  ;;  %v1528_v39 = vpop.f32.mrf.mxu3 }
 0x19d   : > { %v1480_v23 = vpop.f32.mrf.mxu1  ;;  %v3516_v5 = vadd.f32 %v3510_v56, %v1504_v57  ;;  %v3519_v59 = vadd.f32 %v3510_v56, %v1528_v39 }
 0x19e   : > { %1500 = vmatmul.f32.gmra.mxu1 %v1406_v9  ;;  %v3522_v52 = vadd.f32 %v3510_v56, %v1480_v23 }
 0x1aa   : > { %v1507_v38 = vpop.f32.mrf.mxu2 }
 0x1ab   : > { %v3525_v10 = vadd.f32 %v3510_v56, %v1507_v38 }
 0x1b0   : > { %v1459_v33 = vpop.f32.mrf.mxu0 }
 0x1b1   : > { %v3528_v14 = vadd.f32 %v3510_v56, %v1459_v33 }
 0x1b5   : > { %v1531_v50 = vpop.f32.mrf.mxu3 }
 0x1b6   : > { %v3531_v2 = vadd.f32 %v3510_v56, %v1531_v50 }
 0x1b7   : > { %v1483_v51 = vpop.f32.mrf.mxu1 }
 0x1b8   : > { %v3534_v32 = vadd.f32 %v3510_v56, %v1483_v51 }
 0x1bf   : > { %v1510_v43 = vpop.f32.mrf.mxu2 }
 0x1c0   : > { %v3537_v24 = vadd.f32 %v3510_v56, %v1510_v43 }
 0x1c2   : > { %v1462_v6 = vpop.f32.mrf.mxu0 }
 0x1c3   : > { %v3540_v45 = vadd.f32 %v3510_v56, %v1462_v6  ;;  %v1534_v22 = vpop.f32.mrf.mxu3 }
 0x1c4   : > { %v3543_v58 = vadd.f32 %v3510_v56, %v1534_v22 }
 0x1c6   : > { %v1486_v54 = vpop.f32.mrf.mxu1 }
 0x1c7   : > { %v3546_v0 = vadd.f32 %v3510_v56, %v1486_v54 }
 0x1d0   : > { %v1513_v41 = vpop.f32.mrf.mxu2 }
 0x1d1   : > { %v3549_v34 = vadd.f32 %v3510_v56, %v1513_v41 }
 0x1d3   : > { %v1465_v26 = vpop.f32.mrf.mxu0 }
 0x1d4   : > { %v3552_v8 = vadd.f32 %v3510_v56, %v1465_v26 }
 0x1d5   : > { %v1537_v27 = vpop.f32.mrf.mxu3 }
 0x1d6   : > { %v3555_v1 = vadd.f32 %v3510_v56, %v1537_v27 }
 0x1d7   : > { %v1489_v40 = vpop.f32.mrf.mxu1 }
 0x1d8   : > { %v3558_v62 = vadd.f32 %v3510_v56, %v1489_v40 }
 0x1e1   : > { %v1516_v11 = vpop.f32.mrf.mxu2 }
 0x1e2   : > { %v3561_v3 = vadd.f32 %v3510_v56, %v1516_v11 }
 0x1e4   : > { %v1468_v42 = vpop.f32.mrf.mxu0 }
 0x1e5   : > { %v3564_v31 = vadd.f32 %v3510_v56, %v1468_v42 }
 0x1e6   : > { %v1540_v44 = vpop.f32.mrf.mxu3 }
 0x1e7   : > { %v3567_v36 = vadd.f32 %v3510_v56, %v1540_v44 }
 0x1e8   : > { %v1492_v53 = vpop.f32.mrf.mxu1 }
 0x1e9   : > { %v3570_v60 = vadd.f32 %v3510_v56, %v1492_v53 }
 0x1f3   : > { %v1519_v29 = vpop.f32.mrf.mxu2 }
 0x1f4   : > { %v3573_v28 = vadd.f32 %v3510_v56, %v1519_v29 }
 0x1f5   : > { %v1471_v20 = vpop.f32.mrf.mxu0 }
 0x1f6   : > { %v3576_v46 = vadd.f32 %v3510_v56, %v1471_v20 }
 0x1f7   : > { %v1543_v30 = vpop.f32.mrf.mxu3 }
 0x1f8   : > { %v3579_v7 = vadd.f32 %v3510_v56, %v1543_v30 }
 0x1f9   : > { %v1495_v47 = vpop.f32.mrf.mxu1 }
 0x1fa   : > { %v3582_v21 = vadd.f32 %v3510_v56, %v1495_v47 }
 0x204   : > { %v1522_v15 = vpop.f32.mrf.mxu2 }
 0x205   : > { %v3585_v25 = vadd.f32 %v3510_v56, %v1522_v15 }
 0x206   : > { %v1474_v19 = vpop.f32.mrf.mxu0 }
 0x207   : > { %v3588_v37 = vadd.f32 %v3510_v56, %v1474_v19 }
 0x208   : > { %v1546_v63 = vpop.f32.mrf.mxu3 }
 0x209   : > { %v3591_v4 = vadd.f32 %v3510_v56, %v1546_v63 }
 0x20b   : > { %v1498_v48 = vpop.f32.mrf.mxu1 }
 0x20c   : > { %v3594_v16 = vadd.f32 %v3510_v56, %v1498_v48 }
 0x214   : > { %v1525_v61 = vpop.f32.mrf.mxu2 }
 0x215   : > { %v3597_v13 = vadd.f32 %v3510_v56, %v1525_v61 }
 0x217   : > { %v1477_v12 = vpop.f32.mrf.mxu0 }
 0x218   : > { %v3600_v17 = vadd.f32 %v3510_v56, %v1477_v12  ;;  %1591 = sbr.rel (%p1928_p4) target bundleno = 575 (0x23f), region = 60 }
 0x219   : > { %v1549_v18 = vpop.f32.mrf.mxu3 }
 0x21a   : > { %v3603_v49 = vadd.f32 %v3510_v56, %v1549_v18 }
 0x21b   : > { %v1501_v9 = vpop.f32.mrf.mxu1 }
 0x21c   : > { %v3606_v35 = vadd.f32 %v3510_v56, %v1501_v9 }
 0x21d   : > { %v1592_v57 = vmax.f32 %v3513_v55, 0.0  ;;  %v1593_v39 = vmax.f32 %v3528_v14, 0.0  ;;  %v1594_v23 = vmax.f32 %v3540_v45, 0.0  ;;  %v1595_v38 = vmax.f32 %v3552_v8, 0.0 }
 0x21e   : > { %v1596_v33 = vmax.f32 %v3564_v31, 0.0  ;;  %v1597_v50 = vmax.f32 %v3576_v46, 0.0  ;;  %v1598_v56 = vmax.f32 %v3588_v37, 0.0  ;;  %v1599_v51 = vmax.f32 %v3600_v17, 0.0 }
 0x21f   : > { %1624 = vst [vmem:[#allocation2 + $0x28] sm:$0xff] %v1592_v57  ;;  %v1600_v43 = vmax.f32 %v3522_v52, 0.0  ;;  %v1601_v6 = vmax.f32 %v3534_v32, 0.0  ;;  %v1602_v22 = vmax.f32 %v3546_v0, 0.0  ;;  %v1603_v54 = vmax.f32 %v3558_v62, 0.0 }
 0x220   : > { %1625 = vst [vmem:[#allocation2 + $0x30] sm:$0xff] %v1593_v39  ;;  %v1604_v41 = vmax.f32 %v3570_v60, 0.0  ;;  %v1605_v26 = vmax.f32 %v3582_v21, 0.0  ;;  %v1606_v27 = vmax.f32 %v3594_v16, 0.0  ;;  %v1607_v40 = vmax.f32 %v3606_v35, 0.0 }
 0x221   : > { %1626 = vst [vmem:[#allocation2 + $0x48] sm:$0xff] %v1594_v23  ;;  %v1608_v11 = vmax.f32 %v3516_v5, 0.0  ;;  %v1609_v42 = vmax.f32 %v3525_v10, 0.0  ;;  %v1610_v44 = vmax.f32 %v3537_v24, 0.0  ;;  %v1611_v53 = vmax.f32 %v3549_v34, 0.0 }
 0x222   : > { %1627 = vst [vmem:[#allocation2 + $0x50] sm:$0xff] %v1595_v38  ;;  %v1612_v29 = vmax.f32 %v3561_v3, 0.0  ;;  %v1613_v20 = vmax.f32 %v3573_v28, 0.0  ;;  %v1614_v30 = vmax.f32 %v3585_v25, 0.0  ;;  %v1615_v47 = vmax.f32 %v3597_v13, 0.0 }
 0x223   : > { %1628 = vst [vmem:[#allocation2 + $0x68] sm:$0xff] %v1596_v33  ;;  %v1616_v15 = vmax.f32 %v3519_v59, 0.0  ;;  %v1617_v19 = vmax.f32 %v3531_v2, 0.0  ;;  %v1618_v63 = vmax.f32 %v3543_v58, 0.0  ;;  %v1619_v48 = vmax.f32 %v3555_v1, 0.0 }
 0x224   : > { %1629 = vst [vmem:[#allocation2 + $0x70] sm:$0xff] %v1597_v50  ;;  %v1620_v61 = vmax.f32 %v3567_v36, 0.0  ;;  %v1621_v12 = vmax.f32 %v3579_v7, 0.0  ;;  %v1622_v18 = vmax.f32 %v3591_v4, 0.0  ;;  %v1623_v9 = vmax.f32 %v3603_v49, 0.0 }
 0x225   : > { %1630 = vst [vmem:[#allocation2 + $0x88] sm:$0xff] %v1598_v56 }
 0x226   : > { %1631 = vst [vmem:[#allocation2 + $0x90] sm:$0xff] %v1599_v51 }
 0x227   : > { %1632 = vst [vmem:[#allocation2 + $0xa8] sm:$0xff] %v1600_v43 }
 0x228   : > { %1633 = vst [vmem:[#allocation2 + $0xb0] sm:$0xff] %v1601_v6 }
 0x229   : > { %1634 = vst [vmem:[#allocation2 + $0xc8] sm:$0xff] %v1602_v22 }
 0x22a   : > { %1635 = vst [vmem:[#allocation2 + $0xd0] sm:$0xff] %v1603_v54 }
 0x22b   : > { %1636 = vst [vmem:[#allocation2 + $0xe8] sm:$0xff] %v1604_v41 }
 0x22c   : > { %1637 = vst [vmem:[#allocation2 + $0xf0] sm:$0xff] %v1605_v26 }
 0x22d   : > { %1638 = vst [vmem:[#allocation2 + $0x108] sm:$0xff] %v1606_v27 }
 0x22e   : > { %1639 = vst [vmem:[#allocation2 + $0x110] sm:$0xff] %v1607_v40 }
 0x22f   : > { %1640 = vst [vmem:[#allocation2 + $0x128] sm:$0xff] %v1608_v11 }
 0x230   : > { %1641 = vst [vmem:[#allocation2 + $0x130] sm:$0xff] %v1609_v42 }
 0x231   : > { %1642 = vst [vmem:[#allocation2 + $0x148] sm:$0xff] %v1610_v44 }
 0x232   : > { %1643 = vst [vmem:[#allocation2 + $0x150] sm:$0xff] %v1611_v53 }
 0x233   : > { %1644 = vst [vmem:[#allocation2 + $0x168] sm:$0xff] %v1612_v29 }
 0x234   : > { %1645 = vst [vmem:[#allocation2 + $0x170] sm:$0xff] %v1613_v20 }
 0x235   : > { %1646 = vst [vmem:[#allocation2 + $0x188] sm:$0xff] %v1614_v30 }
 0x236   : > { %1647 = vst [vmem:[#allocation2 + $0x190] sm:$0xff] %v1615_v47 }
 0x237   : > { %1648 = vst [vmem:[#allocation2 + $0x1a8] sm:$0xff] %v1616_v15 }
 0x238   : > { %1649 = vst [vmem:[#allocation2 + $0x1b0] sm:$0xff] %v1617_v19 }
 0x239   : > { %1650 = vst [vmem:[#allocation2 + $0x1c8] sm:$0xff] %v1618_v63 }
 0x23a   : > { %1651 = vst [vmem:[#allocation2 + $0x1d0] sm:$0xff] %v1619_v48 }
 0x23b   : > { %1652 = vst [vmem:[#allocation2 + $0x1e8] sm:$0xff] %v1620_v61 }
 0x23c   : > { %1653 = vst [vmem:[#allocation2 + $0x1f0] sm:$0xff] %v1621_v12 }
 0x23d   : > { %1654 = vst [vmem:[#allocation2 + $0x208] sm:$0xff] %v1622_v18 }
 0x23e   : > { %1655 = vst [vmem:[#allocation2 + $0x210] sm:$0xff] %v1623_v9 }
 0x23f PF: > { %p1929_p5 = scmp.ne.s32.totalorder %s4018_s8, 2 }
 0x241   : > { %1659 = sbr.rel (%p1929_p5) target bundleno = 617 (0x269), region = 64 }
 0x246   : > { %v1660_v57 = vld [vmem:[%s2572_s18] sm:$0xff]  ;;  %v1661_v39 = vld [vmem:[%s2572_s18 + $0x8] sm:$0xff]  ;;  %v1662_v23 = vld [vmem:[%s2572_s18 + $0x10] sm:$0xff] }
 0x247   : > { %v1692_v38 = vadd.f32 %v1660_v57, %v3513_v55  ;;  %v1693_v33 = vadd.f32 %v1661_v39, %v3528_v14  ;;  %v1694_v50 = vadd.f32 %v1662_v23, %v3540_v45  ;;  %v1663_v56 = vld [vmem:[%s2572_s18 + $0x18] sm:$0xff]  ;;  %v1664_v51 = vld [vmem:[%s2572_s18 + $0x20] sm:$0xff]  ;;  %v1665_v43 = vld [vmem:[%s2572_s18 + $0x28] sm:$0xff] }
 0x248   : > { %v1695_v6 = vadd.f32 %v1663_v56, %v3552_v8  ;;  %v1666_v22 = vld [vmem:[%s2572_s18 + $0x30] sm:$0xff]  ;;  %v1696_v54 = vadd.f32 %v1664_v51, %v3564_v31  ;;  %v1667_v55 = vld [vmem:[%s2572_s18 + $0x38] sm:$0xff]  ;;  %v1697_v14 = vadd.f32 %v1665_v43, %v3576_v46  ;;  %v1668_v45 = vld [vmem:[%s2572_s18 + $0x40] sm:$0xff] }
 0x249   : > { %1724 = vst [vmem:[%s2572_s18] sm:$0xff] %v1692_v38  ;;  %v1698_v41 = vadd.f32 %v1666_v22, %v3588_v37  ;;  %v1669_v8 = vld [vmem:[%s2572_s18 + $0x48] sm:$0xff]  ;;  %v1699_v26 = vadd.f32 %v1667_v55, %v3600_v17  ;;  %v1670_v31 = vld [vmem:[%s2572_s18 + $0x50] sm:$0xff]  ;;  %v1700_v27 = vadd.f32 %v1668_v45, %v3522_v52  ;;  %v1671_v46 = vld [vmem:[%s2572_s18 + $0x58] sm:$0xff] }
 0x24a   : > { %1725 = vst [vmem:[%s2572_s18 + $0x8] sm:$0xff] %v1693_v33  ;;  %v1701_v40 = vadd.f32 %v1669_v8, %v3534_v32  ;;  %v1672_v37 = vld [vmem:[%s2572_s18 + $0x60] sm:$0xff]  ;;  %v1702_v11 = vadd.f32 %v1670_v31, %v3546_v0  ;;  %v1673_v17 = vld [vmem:[%s2572_s18 + $0x68] sm:$0xff]  ;;  %v1703_v42 = vadd.f32 %v1671_v46, %v3558_v62  ;;  %v1674_v52 = vld [vmem:[%s2572_s18 + $0x70] sm:$0xff] }
 0x24b   : > { %1726 = vst [vmem:[%s2572_s18 + $0x10] sm:$0xff] %v1694_v50  ;;  %v1704_v44 = vadd.f32 %v1672_v37, %v3570_v60  ;;  %v1675_v32 = vld [vmem:[%s2572_s18 + $0x78] sm:$0xff]  ;;  %v1705_v53 = vadd.f32 %v1673_v17, %v3582_v21  ;;  %v1676_v0 = vld [vmem:[%s2572_s18 + $0x80] sm:$0xff]  ;;  %v1706_v29 = vadd.f32 %v1674_v52, %v3594_v16  ;;  %v1677_v62 = vld [vmem:[%s2572_s18 + $0x88] sm:$0xff] }
 0x24c   : > { %1727 = vst [vmem:[%s2572_s18 + $0x18] sm:$0xff] %v1695_v6  ;;  %v1707_v20 = vadd.f32 %v1675_v32, %v3606_v35  ;;  %v1678_v60 = vld [vmem:[%s2572_s18 + $0x90] sm:$0xff]  ;;  %v1708_v30 = vadd.f32 %v1676_v0, %v3516_v5  ;;  %v1679_v21 = vld [vmem:[%s2572_s18 + $0x98] sm:$0xff]  ;;  %v1709_v47 = vadd.f32 %v1677_v62, %v3525_v10  ;;  %v1680_v16 = vld [vmem:[%s2572_s18 + $0xa0] sm:$0xff] }
 0x24d   : > { %1728 = vst [vmem:[%s2572_s18 + $0x20] sm:$0xff] %v1696_v54  ;;  %v1710_v15 = vadd.f32 %v1678_v60, %v3537_v24  ;;  %v1681_v35 = vld [vmem:[%s2572_s18 + $0xa8] sm:$0xff]  ;;  %v1711_v19 = vadd.f32 %v1679_v21, %v3549_v34  ;;  %v1682_v5 = vld [vmem:[%s2572_s18 + $0xb0] sm:$0xff]  ;;  %v1712_v63 = vadd.f32 %v1680_v16, %v3561_v3  ;;  %v1683_v10 = vld [vmem:[%s2572_s18 + $0xb8] sm:$0xff] }
 0x24e   : > { %1729 = vst [vmem:[%s2572_s18 + $0x28] sm:$0xff] %v1697_v14  ;;  %v1713_v48 = vadd.f32 %v1681_v35, %v3573_v28  ;;  %v1684_v24 = vld [vmem:[%s2572_s18 + $0xc0] sm:$0xff]  ;;  %v1714_v61 = vadd.f32 %v1682_v5, %v3585_v25  ;;  %v1685_v34 = vld [vmem:[%s2572_s18 + $0xc8] sm:$0xff]  ;;  %v1715_v12 = vadd.f32 %v1683_v10, %v3597_v13  ;;  %v1686_v3 = vld [vmem:[%s2572_s18 + $0xd0] sm:$0xff] }
 0x24f   : > { %1730 = vst [vmem:[%s2572_s18 + $0x30] sm:$0xff] %v1698_v41  ;;  %v1716_v18 = vadd.f32 %v1684_v24, %v3519_v59  ;;  %v1687_v28 = vld [vmem:[%s2572_s18 + $0xd8] sm:$0xff]  ;;  %v1717_v9 = vadd.f32 %v1685_v34, %v3531_v2  ;;  %v1688_v57 = vld [vmem:[%s2572_s18 + $0xe0] sm:$0xff]  ;;  %v1718_v25 = vadd.f32 %v1686_v3, %v3543_v58  ;;  %v1689_v13 = vld [vmem:[%s2572_s18 + $0xe8] sm:$0xff] }
 0x250   : > { %1731 = vst [vmem:[%s2572_s18 + $0x38] sm:$0xff] %v1699_v26  ;;  %v1719_v39 = vadd.f32 %v1687_v28, %v3555_v1  ;;  %v1690_v23 = vld [vmem:[%s2572_s18 + $0xf0] sm:$0xff]  ;;  %v1720_v59 = vadd.f32 %v1688_v57, %v3567_v36  ;;  %v1691_v38 = vld [vmem:[%s2572_s18 + $0xf8] sm:$0xff]  ;;  %v1721_v2 = vadd.f32 %v1689_v13, %v3579_v7 }
 0x251   : > { %1732 = vst [vmem:[%s2572_s18 + $0x40] sm:$0xff] %v1700_v27  ;;  %v1722_v33 = vadd.f32 %v1690_v23, %v3591_v4  ;;  %v1723_v58 = vadd.f32 %v1691_v38, %v3603_v49 }
 0x252   : > { %1733 = vst [vmem:[%s2572_s18 + $0x48] sm:$0xff] %v1701_v40 }
 0x253   : > { %1734 = vst [vmem:[%s2572_s18 + $0x50] sm:$0xff] %v1702_v11 }
 0x254   : > { %1735 = vst [vmem:[%s2572_s18 + $0x58] sm:$0xff] %v1703_v42 }
 0x255   : > { %1736 = vst [vmem:[%s2572_s18 + $0x60] sm:$0xff] %v1704_v44 }
 0x256   : > { %1737 = vst [vmem:[%s2572_s18 + $0x68] sm:$0xff] %v1705_v53 }
 0x257   : > { %1738 = vst [vmem:[%s2572_s18 + $0x70] sm:$0xff] %v1706_v29 }
 0x258   : > { %1739 = vst [vmem:[%s2572_s18 + $0x78] sm:$0xff] %v1707_v20 }
 0x259   : > { %1740 = vst [vmem:[%s2572_s18 + $0x80] sm:$0xff] %v1708_v30 }
 0x25a   : > { %1741 = vst [vmem:[%s2572_s18 + $0x88] sm:$0xff] %v1709_v47 }
 0x25b   : > { %1742 = vst [vmem:[%s2572_s18 + $0x90] sm:$0xff] %v1710_v15 }
 0x25c   : > { %1743 = vst [vmem:[%s2572_s18 + $0x98] sm:$0xff] %v1711_v19 }
 0x25d   : > { %1744 = vst [vmem:[%s2572_s18 + $0xa0] sm:$0xff] %v1712_v63 }
 0x25e   : > { %1745 = vst [vmem:[%s2572_s18 + $0xa8] sm:$0xff] %v1713_v48 }
 0x25f   : > { %1746 = vst [vmem:[%s2572_s18 + $0xb0] sm:$0xff] %v1714_v61 }
 0x260   : > { %1747 = vst [vmem:[%s2572_s18 + $0xb8] sm:$0xff] %v1715_v12 }
 0x261   : > { %1748 = vst [vmem:[%s2572_s18 + $0xc0] sm:$0xff] %v1716_v18 }
 0x262   : > { %1749 = vst [vmem:[%s2572_s18 + $0xc8] sm:$0xff] %v1717_v9 }
 0x263   : > { %1750 = vst [vmem:[%s2572_s18 + $0xd0] sm:$0xff] %v1718_v25 }
 0x264   : > { %1751 = vst [vmem:[%s2572_s18 + $0xd8] sm:$0xff] %v1719_v39 }
 0x265   : > { %1752 = vst [vmem:[%s2572_s18 + $0xe0] sm:$0xff] %v1720_v59 }
 0x266   : > { %1753 = vst [vmem:[%s2572_s18 + $0xe8] sm:$0xff] %v1721_v2 }
 0x267   : > { %1754 = vst [vmem:[%s2572_s18 + $0xf0] sm:$0xff] %v1722_v33 }
 0x268   : > { %1755 = vst [vmem:[%s2572_s18 + $0xf8] sm:$0xff] %v1723_v58 }
 0x269 PF: > { %s3989_s2 = sld [smem:[#allocation16_spill]]  ;;  %s1769_s10 = sshll.u32 %s2572_s18, 4  ;;  %s1770_s10 = int_to_ptr.vmem [resolvable:$true] %s1769_s10 }
 0x26a   : > { %s3991_s21 = sld [smem:[#allocation61_spill]]  ;;  %s1757_s12 = scalar_lea.sflag [#allocation5], %s2540_s27 }
 0x26f   : > { %s1938_s7 = sshll.u32 %s3989_s2, 8 }
 0x270   : > { %s3992_s9 = smov %s3991_s21  ;;  %s1768_s22 = scalar_lea.hbm %s3991_s21, %s1938_s7 }
 0x271   : > { %s1771_s11 = sshll.u32 %s1768_s22, 4  ;;  %s2221_s30 = scalar_lea.hbm %s3992_s9, 512  ;;  %s1772_s11 = int_to_ptr.hbm [resolvable:$true] %s1771_s11 }
 0x272   : > { %s2215_s5 = sshra.s32 %s1772_s11, 4  ;;  %s2216_s5 = int_to_ptr.hbm [resolvable:$true] %s2215_s5 }
 0x273   : > { %s2217_s26 = scalar_lea.hbm %s2216_s5, 256  ;;  %p2222_p11 = scmp.lt.s32.totalorder %s2216_s5, %s3992_s9 }
 0x274   : > { %p2218_p6 = scmp.ne.s32.totalorder %s2216_s5, %s2217_s26  ;;  %p2223_p2 = scmp.lt.s32.totalorder %s2221_s30, %s2217_s26 }
 0x276   : > { %p2219_p10 = pnand %p2218_p6, %p2503_p0  ;;  %p2224_p8 = por %p2223_p2, %p2222_p11 }
 0x278   : > { %p2220_p1 = pneg %p2219_p10 }
 0x27a   : > { %p2225_p9 = pnand %p2224_p8, %p2220_p1 }
 0x27c   : > { %2228 = shalt.err (!%p2225_p9)
}
 0x27d   : > { %s2332_s27 = smov 128   ;;  %s2333_s6 = smov 8  }
 0x27e   : > { %1993 = dma.vmem_to_hbm [thread:$0]  (%p2503_p0), %s1770_s10, 4096, %s1772_s11, %s1757_s12, %s2332_s27, %s2332_s27, %s2333_s6  }
 0x27f PF: > { %s3993_s29 = sld [smem:[#allocation13_spill]]  ;;  %p2010_p7 = scmp.ge.s32.totalorder %s2327_s25, 2 }
 0x281   : > { %p2006_p12 = pnand %p2010_p7, %p2510_p3 }
 0x283   : > { %p2007_p13 = pneg %p2006_p12 }
 0x285   : > { %s1786_s4 = sand.u32 1, %s3993_s29  }
 0x286   : > { %s1787_s18 = scalar_lea.sflag [#allocation5], %s1786_s4 }
 0x287   : > { %2282 = dma.done.wait (%p2007_p13), %s1787_s18, 4096  }
 0x288   : > { %2284 = vsyncadd (%p2007_p13), %s1787_s18, 4294963200  ;;  %s23_s25 = sadd.s32 1, %s2327_s25   ;;  %s3995_s2 = sld [smem:[#allocation19_spill]] }
 0x289   : > { %p20_p4 = scmp.ge.s32.totalorder %s23_s25, 50   ;;  %s3996_s24 = sld [smem:[#allocation14_spill]] }
 0x28a   : > { %s3997_s20 = sld [smem:[#allocation23_spill]]  ;;  %s4001_s15 = smov %s2291_s16 }
 0x28b   : > { %s3998_s22 = sld [smem:[#allocation17_spill]]  ;;  %s4002_s16 = smov %s2295_s17 }
 0x28c   : > { %s3999_s7 = sld [smem:[#allocation18_spill]]  ;;  %s4004_s18 = smov %s2303_s19 }
 0x28d   : > { %s4000_s1 = sld [smem:[#allocation20_spill]]  ;;  %s4006_s21 = smov %s2319_s23 }
 0x28e   : > { %s4003_s17 = smov %s3995_s2 }
 0x28f   : > { %s4005_s19 = smov %s3996_s24  ;;  %22 = sbr.rel (!%p20_p4) target bundleno = 15 (0xf), region = 127 }
 0x292   : > { %s4007_s23 = smov %s3999_s7 }
 0x293   : > { %s4008_s24 = smov %s4000_s1 }
 0x294   :  { %1793 = vsyncpa [#allocation4], 1 }
 0x295   :  { %1795 = vsyncpa [#allocation4 + $0x1], 1 }
 0x296   :  { %1796 = vsyncpa [#allocation7], 1 }
 0x297   :  { %1798 = vsyncpa [#allocation7 + $0x1], 1 }
 0x298   :  { %1799 = vsyncpa [#allocation5], 1 }
 0x299   :  { %1801 = vsyncpa [#allocation5 + $0x1], 1 }

</bundles_post_ra>
